<compile_context>
chip_gen: v6e
topology: v6e:2x2x1
jax: 0.10.0
libtpu: 0.0.40
codegen_flags: <defaults>
</compile_context>

<pallas_src>
import jax
import jax.numpy as jnp
import numpy as np
from jax.experimental import pallas as pl
from jax.experimental.pallas import tpu as pltpu

CHAR_EMBED = 50
CNN_KERNEL = 5
DROPOUT_RATE = 0.3
MAX_WORD_LEN = 21


def _ceil_to(x, m):
    return ((x + m - 1) // m) * m


def _char_cnn_highway_kernel(x_ref, cw_ref, cb_ref, wp_ref, bp_ref, wg_ref, bg_ref, o_ref):
    """One tile of words: conv1d(valid) + ReLU + max-pool-over-time + highway.

    x_ref : (m_word, TN, e_char)  bf16  (word-position major; TN % 16 == 0)
    cw_ref: (K, e_char, Fp)       bf16  (reordered + zero-padded Conv1d weight)
    cb_ref: (1, Fp)               f32
    wp_ref/wg_ref: (Fp, Fp)       bf16  (nn.Linear weights transposed: in x out, padded)
    bp_ref/bg_ref: (1, Fp)        f32
    o_ref : (TN, Fp)              f32   (lane-dense: Fp is a multiple of 128)
    """
    m_word, TN, e_char = x_ref.shape
    K = cw_ref.shape[0]
    Fp = cw_ref.shape[2]
    L = m_word - K + 1  # valid conv output length

    # conv[t, n, f] = sum_{k,c} x[t+k, n, c] * W[k, c, f]
    # -> K big matmuls with M = L*TN, contracting over e_char, f32 accumulation.
    def shifted(k):
        # (L, TN, e_char) -> (L*TN, e_char): layout-trivial because TN % 16 == 0.
        return x_ref[k:k + L].reshape(L * TN, e_char)

    acc = jnp.dot(shifted(0), cw_ref[0], preferred_element_type=jnp.float32)
    for k in range(1, K):
        acc = acc + jnp.dot(shifted(k), cw_ref[k], preferred_element_type=jnp.float32)

    # Max over the conv time axis first, then bias + ReLU once
    # (ReLU/max commute; the bias is time-invariant).
    pooled = jnp.max(acc.reshape(L, TN, Fp), axis=0)            # (TN, Fp) f32
    pooled = jnp.maximum(pooled + cb_ref[...], 0.0)

    # Highway network: matmuls in bf16 on the MXU (f32 accumulate); sigmoid -> EUP.
    pooled_bf = pooled.astype(wp_ref.dtype)
    proj = jnp.maximum(
        jnp.dot(pooled_bf, wp_ref[...], preferred_element_type=jnp.float32) + bp_ref[...], 0.0)
    gate = jax.nn.sigmoid(
        jnp.dot(pooled_bf, wg_ref[...], preferred_element_type=jnp.float32) + bg_ref[...])
    hwy = gate * proj + (1.0 - gate) * pooled

    # TODO(synk): nn.Dropout(0.3) applied as identity (eval mode); PyTorch RNG mask
    # is not reproducible here.
    o_ref[...] = hwy.astype(o_ref.dtype)


def model_embeddings_forward(x_padded, params, *, embed_size, tile_n=256):
    """x_padded: (sent_len, batch, max_word_len) int32 -> (sent_len, batch, embed_size) f32.

    tile_n is a tunable; 256 is a good default for v6e (keep <= ~256 on v5e's smaller
    scoped VMEM; on v7x keep grid length >= 2 so both TensorCores get work).
    """
    emb_table = params["char_embedding"]   # (V, e_char) f32
    conv_w = params["conv_w"]              # (F, e_char, K)  PyTorch Conv1d layout
    conv_b = params["conv_b"]              # (F,)
    w_proj = params["w_proj"]              # (F, F)          PyTorch nn.Linear (out, in)
    b_proj = params["b_proj"]
    w_gate = params["w_gate"]
    b_gate = params["b_gate"]

    sent_len, batch, m_word = x_padded.shape
    e_char = emb_table.shape[1]
    F = embed_size
    Fp = _ceil_to(F, 128)                  # lane-dense filter / output dimension
    N = sent_len * batch
    L = m_word - CNN_KERNEL + 1

    # Effective word tile: multiple of 16 (bf16 sublane packing), capped by N.
    tn = _ceil_to(min(tile_n, N), 16)
    n_pad = _ceil_to(N, tn)

    # Glue: char-embedding gather, word-position-major layout, bf16 for the kernel.
    # TODO(synk): the gather could be moved in-kernel (indices + small table) to cut
    # HBM traffic further; kept in the wrapper with a bf16 cast for simplicity.
    idx = x_padded.reshape(N, m_word).T                        # (m_word, N)
    x_emb = emb_table[idx].astype(jnp.bfloat16)                # (m_word, N, e_char)
    if n_pad != N:
        x_emb = jnp.pad(x_emb, ((0, 0), (0, n_pad - N), (0, 0)))

    # Weight re-layouts + zero-padding of the filter dim to Fp (glue).
    cw = jnp.transpose(conv_w, (2, 1, 0))                      # (K, e_char, F)
    cw = jnp.pad(cw, ((0, 0), (0, 0), (0, Fp - F))).astype(jnp.bfloat16)
    cb = jnp.pad(conv_b, (0, Fp - F)).reshape(1, Fp).astype(jnp.float32)
    wp = jnp.pad(w_proj.T, ((0, Fp - F), (0, Fp - F))).astype(jnp.bfloat16)
    bp = jnp.pad(b_proj, (0, Fp - F)).reshape(1, Fp).astype(jnp.float32)
    wg = jnp.pad(w_gate.T, ((0, Fp - F), (0, Fp - F))).astype(jnp.bfloat16)
    bg = jnp.pad(b_gate, (0, Fp - F)).reshape(1, Fp).astype(jnp.float32)

    grid = (n_pad // tn,)

    cost = pl.CostEstimate(
        flops=2 * n_pad * L * CNN_KERNEL * e_char * Fp + 2 * 2 * n_pad * Fp * Fp,
        transcendentals=n_pad * Fp,                            # sigmoid
        bytes_accessed=(x_emb.size * 2 + cw.size * 2 + wp.size * 2 + wg.size * 2
                        + (cb.size + bp.size + bg.size) * 4 + n_pad * Fp * 4),
    )

    out = pl.pallas_call(
        _char_cnn_highway_kernel,
        out_shape=jax.ShapeDtypeStruct((n_pad, Fp), jnp.float32),
        grid_spec=pltpu.PrefetchScalarGridSpec(
            num_scalar_prefetch=0,
            grid=grid,
            in_specs=[
                pl.BlockSpec((m_word, tn, e_char), lambda i: (0, i, 0)),
                pl.BlockSpec((CNN_KERNEL, e_char, Fp), lambda i: (0, 0, 0)),
                pl.BlockSpec((1, Fp), lambda i: (0, 0)),
                pl.BlockSpec((Fp, Fp), lambda i: (0, 0)),
                pl.BlockSpec((1, Fp), lambda i: (0, 0)),
                pl.BlockSpec((Fp, Fp), lambda i: (0, 0)),
                pl.BlockSpec((1, Fp), lambda i: (0, 0)),
            ],
            out_specs=pl.BlockSpec((tn, Fp), lambda i: (i, 0)),
        ),
        compiler_params=pltpu.CompilerParams(
            dimension_semantics=("parallel",),
            # 32 MiB scoped VMEM: raises v5e's 16 MiB default, matches the
            # v6e/v7x defaults, and stays well under v7x's 64 MiB physical VMEM.
            vmem_limit_bytes=32 * 1024 * 1024,
        ),
        cost_estimate=cost,
    )(x_emb, cw, cb, wp, bp, wg, bg)

    return out[:N, :F].reshape(sent_len, batch, F)


def reference_forward(x_padded, params, embed_size):
    """Pure-JAX (f32) mirror of the PyTorch forward (eval mode), for verification."""
    emb = params["char_embedding"][x_padded]                     # (S, B, M, E)
    S, B, M, E = emb.shape
    x = jnp.transpose(emb.reshape(S * B, M, E), (0, 2, 1))       # (N, E, M) = NCW
    conv = jax.lax.conv_general_dilated(
        x, params["conv_w"], window_strides=(1,), padding="VALID",
        dimension_numbers=("NCH", "OIH", "NCH"),
        preferred_element_type=jnp.float32)
    conv = conv + params["conv_b"][None, :, None]
    conv = jnp.maximum(conv, 0.0)
    pooled = jnp.max(conv, axis=2)                               # (N, F)
    proj = jnp.maximum(pooled @ params["w_proj"].T + params["b_proj"], 0.0)
    gate = jax.nn.sigmoid(pooled @ params["w_gate"].T + params["b_gate"])
    hwy = gate * proj + (1.0 - gate) * pooled
    return hwy.reshape(S, B, embed_size)


if __name__ == "__main__":
    key = jax.random.PRNGKey(0)
    k_emb, k_cw, k_cb, k_wp, k_bp, k_wg, k_bg, k_x = jax.random.split(key, 8)

    embed_size = 32
    vocab_size = 30
    pad_idx = 0              # vocab.char2id['<pad>']
    sent_len, batch = 8, 2

    scale = 0.1
    char_embedding = jax.random.normal(k_emb, (vocab_size, CHAR_EMBED), jnp.float32) * scale
    char_embedding = char_embedding.at[pad_idx].set(0.0)   # padding_idx row is zero

    params = {
        "char_embedding": char_embedding,
        "conv_w": jax.random.normal(k_cw, (embed_size, CHAR_EMBED, CNN_KERNEL), jnp.float32) * scale,
        "conv_b": jax.random.normal(k_cb, (embed_size,), jnp.float32) * scale,
        "w_proj": jax.random.normal(k_wp, (embed_size, embed_size), jnp.float32) * scale,
        "b_proj": jax.random.normal(k_bp, (embed_size,), jnp.float32) * scale,
        "w_gate": jax.random.normal(k_wg, (embed_size, embed_size), jnp.float32) * scale,
        "b_gate": jax.random.normal(k_bg, (embed_size,), jnp.float32) * scale,
    }

    x_padded = jax.random.randint(k_x, (sent_len, batch, MAX_WORD_LEN), 0, vocab_size, jnp.int32)

    out = model_embeddings_forward(x_padded, params, embed_size=embed_size)
    out = jax.block_until_ready(out)
    assert out.shape == (sent_len, batch, embed_size)

    ref = jax.block_until_ready(reference_forward(x_padded, params, embed_size))
    # bf16 matmul inputs (f32 accumulation) -> slightly looser tolerance than pure f32.
    np.testing.assert_allclose(np.asarray(out), np.asarray(ref), rtol=2e-2, atol=2e-2)

    print("KERNEL_OK")
</pallas_src>

<mosaic_0001>
module attributes {stable_mosaic.version = 11 : i64} {
  func.func @_char_cnn_highway_kernel(%arg0: i32, %arg1: memref<21x16x50xbf16, #tpu.memory_space<vmem>>, %arg2: memref<5x50x128xbf16, #tpu.memory_space<vmem>>, %arg3: memref<1x128xf32, #tpu.memory_space<vmem>>, %arg4: memref<128x128xbf16, #tpu.memory_space<vmem>>, %arg5: memref<1x128xf32, #tpu.memory_space<vmem>>, %arg6: memref<128x128xbf16, #tpu.memory_space<vmem>>, %arg7: memref<1x128xf32, #tpu.memory_space<vmem>>, %arg8: memref<16x128xf32, #tpu.memory_space<vmem>>) attributes {dimension_semantics = [#tpu.dimension_semantics<parallel>], iteration_bounds = array<i64: 1>, scalar_prefetch = 0 : i64, scratch_operands = 0 : i64, tpu.core_type = #tpu.core_type<tc>, window_params = [{transform_indices = @transform_0, window_bounds = array<i64: 21, 16, 50>}, {pipeline_mode = #tpu.pipeline_mode<synchronous>, transform_indices = @transform_1, window_bounds = array<i64: 5, 50, 128>}, {pipeline_mode = #tpu.pipeline_mode<synchronous>, transform_indices = @transform_2, window_bounds = array<i64: 1, 128>}, {pipeline_mode = #tpu.pipeline_mode<synchronous>, transform_indices = @transform_3, window_bounds = array<i64: 128, 128>}, {pipeline_mode = #tpu.pipeline_mode<synchronous>, transform_indices = @transform_4, window_bounds = array<i64: 1, 128>}, {pipeline_mode = #tpu.pipeline_mode<synchronous>, transform_indices = @transform_5, window_bounds = array<i64: 128, 128>}, {pipeline_mode = #tpu.pipeline_mode<synchronous>, transform_indices = @transform_6, window_bounds = array<i64: 1, 128>}, {transform_indices = @transform_7, window_bounds = array<i64: 16, 128>}]} {
    %c0 = arith.constant 0 : index
    %c0_0 = arith.constant 0 : index
    %c0_1 = arith.constant 0 : index
    %0 = vector.load %arg1[%c0, %c0_0, %c0_1] : memref<21x16x50xbf16, #tpu.memory_space<vmem>>, vector<17x16x50xbf16>
    %1 = vector.shape_cast %0 : vector<17x16x50xbf16> to vector<272x50xbf16>
    %c0_2 = arith.constant 0 : index
    %c0_3 = arith.constant 0 : index
    %c0_4 = arith.constant 0 : index
    %2 = vector.load %arg2[%c0_2, %c0_3, %c0_4] : memref<5x50x128xbf16, #tpu.memory_space<vmem>>, vector<1x50x128xbf16>
    %3 = vector.shape_cast %2 : vector<1x50x128xbf16> to vector<50x128xbf16>
    %cst = arith.constant dense<0.000000e+00> : vector<272x128xf32>
    %4 = tpu.matmul %1, %3, %cst {dimension_numbers = #tpu.dot_dimension_numbers<[1], [0], [0], [1], [0, 0, 1, 1], [], []>} : vector<272x50xbf16>, vector<50x128xbf16>, vector<272x128xf32> -> vector<272x128xf32>
    %c1 = arith.constant 1 : index
    %c0_5 = arith.constant 0 : index
    %c0_6 = arith.constant 0 : index
    %5 = vector.load %arg1[%c1, %c0_5, %c0_6] : memref<21x16x50xbf16, #tpu.memory_space<vmem>>, vector<17x16x50xbf16>
    %6 = vector.shape_cast %5 : vector<17x16x50xbf16> to vector<272x50xbf16>
    %c1_7 = arith.constant 1 : index
    %c0_8 = arith.constant 0 : index
    %c0_9 = arith.constant 0 : index
    %7 = vector.load %arg2[%c1_7, %c0_8, %c0_9] : memref<5x50x128xbf16, #tpu.memory_space<vmem>>, vector<1x50x128xbf16>
    %8 = vector.shape_cast %7 : vector<1x50x128xbf16> to vector<50x128xbf16>
    %cst_10 = arith.constant dense<0.000000e+00> : vector<272x128xf32>
    %9 = tpu.matmul %6, %8, %cst_10 {dimension_numbers = #tpu.dot_dimension_numbers<[1], [0], [0], [1], [0, 0, 1, 1], [], []>} : vector<272x50xbf16>, vector<50x128xbf16>, vector<272x128xf32> -> vector<272x128xf32>
    %10 = arith.addf %4, %9 : vector<272x128xf32>
    %c2 = arith.constant 2 : index
    %c0_11 = arith.constant 0 : index
    %c0_12 = arith.constant 0 : index
    %11 = vector.load %arg1[%c2, %c0_11, %c0_12] : memref<21x16x50xbf16, #tpu.memory_space<vmem>>, vector<17x16x50xbf16>
    %12 = vector.shape_cast %11 : vector<17x16x50xbf16> to vector<272x50xbf16>
    %c2_13 = arith.constant 2 : index
    %c0_14 = arith.constant 0 : index
    %c0_15 = arith.constant 0 : index
    %13 = vector.load %arg2[%c2_13, %c0_14, %c0_15] : memref<5x50x128xbf16, #tpu.memory_space<vmem>>, vector<1x50x128xbf16>
    %14 = vector.shape_cast %13 : vector<1x50x128xbf16> to vector<50x128xbf16>
    %cst_16 = arith.constant dense<0.000000e+00> : vector<272x128xf32>
    %15 = tpu.matmul %12, %14, %cst_16 {dimension_numbers = #tpu.dot_dimension_numbers<[1], [0], [0], [1], [0, 0, 1, 1], [], []>} : vector<272x50xbf16>, vector<50x128xbf16>, vector<272x128xf32> -> vector<272x128xf32>
    %16 = arith.addf %10, %15 : vector<272x128xf32>
    %c3 = arith.constant 3 : index
    %c0_17 = arith.constant 0 : index
    %c0_18 = arith.constant 0 : index
    %17 = vector.load %arg1[%c3, %c0_17, %c0_18] : memref<21x16x50xbf16, #tpu.memory_space<vmem>>, vector<17x16x50xbf16>
    %18 = vector.shape_cast %17 : vector<17x16x50xbf16> to vector<272x50xbf16>
    %c3_19 = arith.constant 3 : index
    %c0_20 = arith.constant 0 : index
    %c0_21 = arith.constant 0 : index
    %19 = vector.load %arg2[%c3_19, %c0_20, %c0_21] : memref<5x50x128xbf16, #tpu.memory_space<vmem>>, vector<1x50x128xbf16>
    %20 = vector.shape_cast %19 : vector<1x50x128xbf16> to vector<50x128xbf16>
    %cst_22 = arith.constant dense<0.000000e+00> : vector<272x128xf32>
    %21 = tpu.matmul %18, %20, %cst_22 {dimension_numbers = #tpu.dot_dimension_numbers<[1], [0], [0], [1], [0, 0, 1, 1], [], []>} : vector<272x50xbf16>, vector<50x128xbf16>, vector<272x128xf32> -> vector<272x128xf32>
    %22 = arith.addf %16, %21 : vector<272x128xf32>
    %c4 = arith.constant 4 : index
    %c0_23 = arith.constant 0 : index
    %c0_24 = arith.constant 0 : index
    %23 = vector.load %arg1[%c4, %c0_23, %c0_24] : memref<21x16x50xbf16, #tpu.memory_space<vmem>>, vector<17x16x50xbf16>
    %24 = vector.shape_cast %23 : vector<17x16x50xbf16> to vector<272x50xbf16>
    %c4_25 = arith.constant 4 : index
    %c0_26 = arith.constant 0 : index
    %c0_27 = arith.constant 0 : index
    %25 = vector.load %arg2[%c4_25, %c0_26, %c0_27] : memref<5x50x128xbf16, #tpu.memory_space<vmem>>, vector<1x50x128xbf16>
    %26 = vector.shape_cast %25 : vector<1x50x128xbf16> to vector<50x128xbf16>
    %cst_28 = arith.constant dense<0.000000e+00> : vector<272x128xf32>
    %27 = tpu.matmul %24, %26, %cst_28 {dimension_numbers = #tpu.dot_dimension_numbers<[1], [0], [0], [1], [0, 0, 1, 1], [], []>} : vector<272x50xbf16>, vector<50x128xbf16>, vector<272x128xf32> -> vector<272x128xf32>
    %28 = arith.addf %22, %27 : vector<272x128xf32>
    %29 = vector.shape_cast %28 : vector<272x128xf32> to vector<17x16x128xf32>
    %cst_29 = arith.constant dense<0xFF800000> : vector<16x128xf32>
    %30 = vector.multi_reduction <maximumf>, %29, %cst_29 [0] : vector<17x16x128xf32> to vector<16x128xf32>
    %c0_30 = arith.constant 0 : index
    %c0_31 = arith.constant 0 : index
    %31 = vector.load %arg3[%c0_30, %c0_31] : memref<1x128xf32, #tpu.memory_space<vmem>>, vector<1x128xf32>
    %32 = vector.broadcast %31 : vector<1x128xf32> to vector<16x128xf32>
    %33 = arith.addf %30, %32 : vector<16x128xf32>
    %cst_32 = arith.constant 0.000000e+00 : f32
    %34 = vector.broadcast %cst_32 : f32 to vector<16x128xf32>
    %35 = arith.maximumf %33, %34 : vector<16x128xf32>
    %36 = arith.truncf %35 : vector<16x128xf32> to vector<16x128xbf16>
    %c0_33 = arith.constant 0 : index
    %c0_34 = arith.constant 0 : index
    %37 = vector.load %arg4[%c0_33, %c0_34] : memref<128x128xbf16, #tpu.memory_space<vmem>>, vector<128x128xbf16>
    %cst_35 = arith.constant dense<0.000000e+00> : vector<16x128xf32>
    %38 = tpu.matmul %36, %37, %cst_35 {dimension_numbers = #tpu.dot_dimension_numbers<[1], [0], [0], [1], [0, 0, 1, 1], [], []>} : vector<16x128xbf16>, vector<128x128xbf16>, vector<16x128xf32> -> vector<16x128xf32>
    %c0_36 = arith.constant 0 : index
    %c0_37 = arith.constant 0 : index
    %39 = vector.load %arg5[%c0_36, %c0_37] : memref<1x128xf32, #tpu.memory_space<vmem>>, vector<1x128xf32>
    %40 = vector.broadcast %39 : vector<1x128xf32> to vector<16x128xf32>
    %41 = arith.addf %38, %40 : vector<16x128xf32>
    %cst_38 = arith.constant 0.000000e+00 : f32
    %42 = vector.broadcast %cst_38 : f32 to vector<16x128xf32>
    %43 = arith.maximumf %41, %42 : vector<16x128xf32>
    %c0_39 = arith.constant 0 : index
    %c0_40 = arith.constant 0 : index
    %44 = vector.load %arg6[%c0_39, %c0_40] : memref<128x128xbf16, #tpu.memory_space<vmem>>, vector<128x128xbf16>
    %cst_41 = arith.constant dense<0.000000e+00> : vector<16x128xf32>
    %45 = tpu.matmul %36, %44, %cst_41 {dimension_numbers = #tpu.dot_dimension_numbers<[1], [0], [0], [1], [0, 0, 1, 1], [], []>} : vector<16x128xbf16>, vector<128x128xbf16>, vector<16x128xf32> -> vector<16x128xf32>
    %c0_42 = arith.constant 0 : index
    %c0_43 = arith.constant 0 : index
    %46 = vector.load %arg7[%c0_42, %c0_43] : memref<1x128xf32, #tpu.memory_space<vmem>>, vector<1x128xf32>
    %47 = vector.broadcast %46 : vector<1x128xf32> to vector<16x128xf32>
    %48 = arith.addf %45, %47 : vector<16x128xf32>
    %49 = arith.negf %48 : vector<16x128xf32>
    %50 = math.exp %49 : vector<16x128xf32>
    %cst_44 = arith.constant 1.000000e+00 : f32
    %51 = vector.broadcast %cst_44 : f32 to vector<16x128xf32>
    %52 = arith.addf %51, %50 : vector<16x128xf32>
    %53 = arith.divf %51, %52 : vector<16x128xf32>
    %54 = arith.mulf %53, %43 : vector<16x128xf32>
    %cst_45 = arith.constant 1.000000e+00 : f32
    %55 = vector.broadcast %cst_45 : f32 to vector<16x128xf32>
    %56 = arith.subf %55, %53 : vector<16x128xf32>
    %57 = arith.mulf %56, %35 : vector<16x128xf32>
    %58 = arith.addf %54, %57 : vector<16x128xf32>
    %c0_46 = arith.constant 0 : index
    %c0_47 = arith.constant 0 : index
    %59 = vector.load %arg8[%c0_46, %c0_47] : memref<16x128xf32, #tpu.memory_space<vmem>>, vector<16x128xf32>
    tpu.vector_store %arg8[%c0_46, %c0_47], %58 {strides = array<i32>} : memref<16x128xf32, #tpu.memory_space<vmem>>, vector<16x128xf32>,
    return
  }
  func.func @transform_0(%arg0: i32) -> (i32, i32, i32) {
    %c0_i32 = arith.constant 0 : i32
    %c0_i32_0 = arith.constant 0 : i32
    %c0_i32_1 = arith.constant 0 : i32
    return %c0_i32, %arg0, %c0_i32_0 : i32, i32, i32
  }
  func.func @transform_1(%arg0: i32) -> (i32, i32, i32) {
    %c0_i32 = arith.constant 0 : i32
    %c0_i32_0 = arith.constant 0 : i32
    %c0_i32_1 = arith.constant 0 : i32
    %c0_i32_2 = arith.constant 0 : i32
    return %c0_i32, %c0_i32_0, %c0_i32_1 : i32, i32, i32
  }
  func.func @transform_2(%arg0: i32) -> (i32, i32) {
    %c0_i32 = arith.constant 0 : i32
    %c0_i32_0 = arith.constant 0 : i32
    %c0_i32_1 = arith.constant 0 : i32
    return %c0_i32, %c0_i32_0 : i32, i32
  }
  func.func @transform_3(%arg0: i32) -> (i32, i32) {
    %c0_i32 = arith.constant 0 : i32
    %c0_i32_0 = arith.constant 0 : i32
    %c0_i32_1 = arith.constant 0 : i32
    return %c0_i32, %c0_i32_0 : i32, i32
  }
  func.func @transform_4(%arg0: i32) -> (i32, i32) {
    %c0_i32 = arith.constant 0 : i32
    %c0_i32_0 = arith.constant 0 : i32
    %c0_i32_1 = arith.constant 0 : i32
    return %c0_i32, %c0_i32_0 : i32, i32
  }
  func.func @transform_5(%arg0: i32) -> (i32, i32) {
    %c0_i32 = arith.constant 0 : i32
    %c0_i32_0 = arith.constant 0 : i32
    %c0_i32_1 = arith.constant 0 : i32
    return %c0_i32, %c0_i32_0 : i32, i32
  }
  func.func @transform_6(%arg0: i32) -> (i32, i32) {
    %c0_i32 = arith.constant 0 : i32
    %c0_i32_0 = arith.constant 0 : i32
    %c0_i32_1 = arith.constant 0 : i32
    return %c0_i32, %c0_i32_0 : i32, i32
  }
  func.func @transform_7(%arg0: i32) -> (i32, i32) {
    %c0_i32 = arith.constant 0 : i32
    %c0_i32_0 = arith.constant 0 : i32
    return %arg0, %c0_i32 : i32, i32
  }
}

</mosaic_0001>

<bundles_post_ra>
// kernel: tpu_custom_call.1
= control target key start
LH: loop header
LB: loop body
LE: loop exit
PB: predicated region body
PF: predicated region fallthrough
CT: control target
= control target key end

     0   :  { %12 = vsyncpa [#allocation3], 0  ;;  %s4142_s0 = inlined_call_operand.hbm [shape: bf16[21,16,50], index: 0, kind: input, shape index: {}]   ;;  %s4143_s1 = inlined_call_operand.hbm [shape: bf16[5,50,128], index: 1, kind: input, shape index: {}]   ;;  %s4144_s2 = inlined_call_operand.vmem [shape: f32[1,128], index: 2, kind: input, shape index: {}]   ;;  %s4145_s3 = inlined_call_operand.hbm [shape: bf16[128,128], index: 3, kind: input, shape index: {}]   ;;  %s4146_s4 = inlined_call_operand.vmem [shape: f32[1,128], index: 4, kind: input, shape index: {}]   ;;  %s4147_s5 = inlined_call_operand.hbm [shape: bf16[128,128], index: 5, kind: input, shape index: {}]   ;;  %s4148_s6 = inlined_call_operand.vmem [shape: f32[1,128], index: 6, kind: input, shape index: {}]   ;;  %s4149_s7 = inlined_call_operand.hbm [shape: f32[16,128], index: 7, kind: output, shape index: {}]  }
   0x1   :  { %13 = vsyncpa [#allocation6], 0 }
   0x2   :  { %14 = vsyncpa [#allocation9], 0 }
   0x3   :  { %15 = vsyncpa [#allocation4], 0  ;;  %s3366_s24 = smov [#allocation5]   ;;  %s3367_s26 = smov [#allocation2]  }
   0x4   :  { %s33_s25 = sshll.u32 %s3366_s24, 4  ;;  %s21_s27 = sshll.u32 %s3367_s26, 4  ;;  %s34_s25 = int_to_ptr.vmem [resolvable:$true] %s33_s25  ;;  %s22_s27 = int_to_ptr.vmem [resolvable:$true] %s21_s27 }
   0x5   :  { %s3266_s28 = scalar_lea.vmem %s34_s25, 2240  ;;  %p3271_p1 = scmp.lt.s32.totalorder %s34_s25, %s34_s25 }
   0x6   :  { %p3267_p0 = scmp.ne.s32.totalorder %s34_s25, %s3266_s28  ;;  %p3272_p2 = scmp.lt.s32.totalorder %s3266_s28, %s3266_s28 }
   0x8   :  { %p3273_p3 = por %p3272_p2, %p3271_p1 }
   0xa   :  { %p3274_p4 = pnand %p3273_p3, %p3267_p0 }
   0xc   :  { %3277 = shalt.err (!%p3274_p4)
}
   0xd   :  { %s3368_s29 = smov 64   ;;  %s3369_s30 = smov 4  }
   0xe   :  { %39 = dma.hbm_to_vmem [thread:$0]  %s4143_s1, 2240, %s34_s25, [#allocation6], %s3368_s29, %s3368_s29, %s3369_s30  }
   0xf   :  { %s3286_s10 = scalar_lea.vmem %s22_s27, 2688  ;;  %p3291_p6 = scmp.lt.s32.totalorder %s22_s27, %s22_s27 }
  0x10   :  { %p3287_p5 = scmp.ne.s32.totalorder %s22_s27, %s3286_s10  ;;  %p3292_p7 = scmp.lt.s32.totalorder %s3286_s10, %s3286_s10 }
  0x12   :  { %p3293_p8 = por %p3292_p7, %p3291_p6 }
  0x14   :  { %p3294_p9 = pnand %p3293_p8, %p3287_p5 }
  0x16   :  { %3297 = shalt.err (!%p3294_p9)
}
  0x17   :  { %27 = dma.hbm_to_vmem [thread:$0]  %s4142_s0, 2688, %s22_s27, [#allocation3], %s3368_s29, %s3368_s29, %s3369_s30  }
  0x18   :  { %s3370_s13 = smov [#allocation7]   ;;  %s3371_s15 = smov [#allocation8]  }
  0x19   :  { %s47_s14 = sshll.u32 %s3370_s13, 4  ;;  %s61_s16 = sshll.u32 %s3371_s15, 4  ;;  %s48_s14 = int_to_ptr.vmem [resolvable:$true] %s47_s14  ;;  %s62_s16 = int_to_ptr.vmem [resolvable:$true] %s61_s16 }
  0x1a   :  { %s3306_s1 = scalar_lea.vmem %s48_s14, 1024  ;;  %p3311_p11 = scmp.lt.s32.totalorder %s48_s14, %s48_s14 }
  0x1b   :  { %p3307_p10 = scmp.ne.s32.totalorder %s48_s14, %s3306_s1  ;;  %p3312_p12 = scmp.lt.s32.totalorder %s3306_s1, %s3306_s1 }
  0x1d   :  { %p3313_p13 = por %p3312_p12, %p3311_p11 }
  0x1f   :  { %p3314_p0 = pnand %p3313_p13, %p3307_p10 }
  0x21   :  { %3317 = shalt.err (!%p3314_p0)
}
  0x22   :  { %53 = dma.hbm_to_vmem [thread:$0]  %s4145_s3, 1024, %s48_s14, [#allocation6], %s3368_s29, %s3368_s29, %s3369_s30  }
  0x23   :  { %s3326_s0 = scalar_lea.vmem %s62_s16, 1024  ;;  %p3331_p2 = scmp.lt.s32.totalorder %s62_s16, %s62_s16 }
  0x24   :  { %p3327_p1 = scmp.ne.s32.totalorder %s62_s16, %s3326_s0  ;;  %p3332_p3 = scmp.lt.s32.totalorder %s3326_s0, %s3326_s0 }
  0x26   :  { %p3333_p4 = por %p3332_p3, %p3331_p2 }
  0x28   :  { %p3334_p5 = pnand %p3333_p4, %p3327_p1 }
  0x2a   :  { %3337 = shalt.err (!%p3334_p5)
}
  0x2b   :  { %67 = dma.hbm_to_vmem [thread:$0]  %s4147_s5, 1024, %s62_s16, [#allocation9], %s3368_s29, %s3368_s29, %s3369_s30  }
  0x2c   :  { %3358 = dma.done.wait [#allocation3], 2688  }
  0x2d   :  { %3359 = vsyncadd [#allocation3], 4294964608 }
  0x2e   :  { %3360 = dma.done.wait [#allocation6], 3264  }
  0x2f   :  { %3361 = vsyncadd [#allocation6], 4294964032 }
  0x30   :  { %3362 = dma.done.wait [#allocation9], 1024  }
  0x31   :  { %3363 = vsyncadd [#allocation9], 4294966272  ;;  %v3372_v0 = vmov 0.0   ;;  %vm3373_vm0 = vmmov 0   ;;  %vm325_vm1 = vcmask 1040384   ;;  %v3130_v3 = vld [vmem:[#allocation5 + $0x2c] sm:$0xff]  }
  0x32   :  { %2690 = vmatprep.subr.bf16.mxu0 %v3372_v0  ;;  %3110 = vmatprep.subr.bf16.mxu1 %v3372_v0  ;;  %v3129_v1 = vld [vmem:[#allocation5 + $0x34] ss:$0 sps:$4 sm:$0x11]   ;;  %v3131_v4 = vld [vmem:[#allocation5 + $0x24] sm:$0xff]   ;;  %v3132_v6 = vld [vmem:[#allocation5 + $0x1c] sm:$0xff]   ;;  %vm273_vm2 = vcmask 408576  }
  0x33   :  { %2698 = vmatprep.mubr.msk.bf16.mxu0 %vm3373_vm0, %v3372_v0  ;;  %2742 = vmatprep.mubr.msk.bf16.mxu1 %vm3373_vm0, %v3372_v0  ;;  %v327_v2 = vsel %vm325_vm1, %v3129_v1, 0  ;;  %v3135_v5 = vld [vmem:[#allocation5 + $0x50] ss:$0 sps:$4 sm:$0x11]   ;;  %v3133_v7 = vld [vmem:[#allocation2 + $0x8] sm:$0xff]   ;;  %v3134_v8 = vld [vmem:[#allocation2 + $0x60] sm:$0xff]  }
  0x34   :  { %2691 = vmatpush3.bf16.msra.mxu0 %v327_v2  ;;  %3114 = vmatpush3.bf16.msra.mxu1 %v327_v2  ;;  %v3145_v9 = vld [vmem:[#allocation5 + $0x18] ss:$0 sps:$4 sm:$0x11]   ;;  %v1028_v10 = vsel %vm325_vm1, %v3135_v5, 0  ;;  %v3140_v12 = vld [vmem:[#allocation5 + $0x48] sm:$0xff]   ;;  %v3146_v14 = vld [vmem:[#allocation5 + $0x10] sm:$0xff]  }
  0x35   :  { %2692 = vmatprep.subr.bf16.mxu0 %v3372_v0  ;;  %3111 = vmatprep.subr.bf16.mxu1 %v3372_v0  ;;  %v656_v11 = vsel %vm325_vm1, %v3145_v9, 0  ;;  %v3136_v13 = vld [vmem:[#allocation2 + $0x10] sm:$0xff]   ;;  %v3137_v15 = vld [vmem:[#allocation2 + $0x68] sm:$0xff]   ;;  %v3138_v18 = vld [vmem:[#allocation2 + $0x18] sm:$0xff]  }
  0x36   :  { %v3151_v16 = vld [vmem:[#allocation5 + $0x40] sm:$0xff]   ;;  %v3149_v17 = vld [vmem:[#allocation5 + $0x8] sm:$0xff]   ;;  %v3158_v19 = vld [vmem:[#allocation5 + $0x38] sm:$0xff]  }
  0x37   :  { %v3150_v20 = vld [vmem:[#allocation5] sm:$0xff]   ;;  %v3139_v21 = vld [vmem:[#allocation2 + $0x70] sm:$0xff]   ;;  %v3141_v22 = vld [vmem:[#allocation2 + $0x20] sm:$0xff]  }
  0x38   :  { %2693 = vmatpush3.bf16.msra.mxu0 %v3130_v3  ;;  %3115 = vmatpush3.bf16.msra.mxu1 %v3130_v3  ;;  %v3142_v23 = vld [vmem:[#allocation2 + $0x78] sm:$0xff]   ;;  %v3143_v24 = vld [vmem:[#allocation2 + $0x28] sm:$0xff]   ;;  %v3144_v25 = vld [vmem:[#allocation2 + $0x80] sm:$0xff]  }
  0x39   :  { %2694 = vmatprep.subr.bf16.mxu0 %v3372_v0  ;;  %3112 = vmatprep.subr.bf16.mxu1 %v3372_v0  ;;  %v3147_v26 = vld [vmem:[#allocation2 + $0x30] sm:$0xff]   ;;  %v3148_v27 = vld [vmem:[#allocation2 + $0x88] sm:$0xff]   ;;  %v3152_v29 = vld [vmem:[#allocation2 + $0x38] sm:$0xff]  }
  0x3a   :  { %v3163_v28 = vld [vmem:[#allocation5 + $0x6c] ss:$0 sps:$4 sm:$0x11]   ;;  %v3153_v30 = vld [vmem:[#allocation2] sm:$0xff]   ;;  %v3175_v32 = vld [vmem:[#allocation5 + $0x64] sm:$0xff]  }
  0x3b   :  { %v1434_v31 = vsel %vm325_vm1, %v3163_v28, 0  ;;  %v3154_v33 = vld [vmem:[#allocation2 + $0x40] sm:$0xff]   ;;  %v3155_v34 = vld [vmem:[#allocation2 + $0x8] sm:$0xff]   ;;  %v3157_v38 = vld [vmem:[#allocation2 + $0x10] sm:$0xff]  }
  0x3c   :  { %2695 = vmatpush3.bf16.msra.mxu0 %v3131_v4  ;;  %3116 = vmatpush3.bf16.msra.mxu1 %v3131_v4  ;;  %v3185_v35 = vld [vmem:[#allocation5 + $0x5c] sm:$0xff]   ;;  %v3193_v36 = vld [vmem:[#allocation5 + $0x54] sm:$0xff]   ;;  %v3159_v39 = vld [vmem:[#allocation2 + $0x50] sm:$0xff]  }
  0x3d   :  { %2696 = vmatprep.subr.bf16.mxu0 %v3372_v0  ;;  %3113 = vmatprep.subr.bf16.mxu1 %v3372_v0  ;;  %v3156_v37 = vld [vmem:[#allocation2 + $0x48] sm:$0xff]   ;;  %v3160_v40 = vld [vmem:[#allocation2 + $0x18] sm:$0xff]   ;;  %v3162_v42 = vld [vmem:[#allocation2 + $0x20] sm:$0xff]  }
  0x3e   :  { %v3161_v41 = vld [vmem:[#allocation2 + $0x58] sm:$0xff]   ;;  %v3166_v43 = vld [vmem:[#allocation5 + $0x88] ss:$0 sps:$4 sm:$0x11]   ;;  %v3164_v44 = vld [vmem:[#allocation2 + $0x28] sm:$0xff]  }
  0x3f   :  { %v3165_v45 = vld [vmem:[#allocation2 + $0x10] sm:$0xff]   ;;  %v1840_v46 = vsel %vm325_vm1, %v3166_v43, 0  ;;  %v3176_v47 = vld [vmem:[#allocation5 + $0x80] sm:$0xff]   ;;  %v3168_v49 = vld [vmem:[#allocation2 + $0x18] sm:$0xff]  }
  0x40   :  { %2697 = vmatpush3.bf16.msra.mxu0 %v3132_v6  ;;  %3117 = vmatpush3.bf16.msra.mxu1 %v3132_v6  ;;  %v3167_v48 = vld [vmem:[#allocation2 + $0x30] sm:$0xff]   ;;  %v3186_v50 = vld [vmem:[#allocation5 + $0x78] sm:$0xff]   ;;  %v3196_v51 = vld [vmem:[#allocation5 + $0x70] sm:$0xff]  }
  0x41   :  { %2842 = vmatprep.subr.bf16.mxu0 %v3372_v0  ;;  %2766 = vmatprep.subr.bf16.mxu1 %v3372_v0  ;;  %v3169_v52 = vld [vmem:[#allocation2 + $0x38] sm:$0xff]   ;;  %v3170_v53 = vld [vmem:[#allocation2 + $0x20] sm:$0xff]   ;;  %v3172_v55 = vld [vmem:[#allocation2 + $0x28] sm:$0xff]  }
  0x42   :  { %v3171_v54 = vld [vmem:[#allocation2 + $0x40] sm:$0xff]   ;;  %v3173_v56 = vld [vmem:[#allocation2 + $0x48] sm:$0xff]   ;;  %v3174_v57 = vld [vmem:[#allocation2 + $0x30] sm:$0xff]  }
  0x43   :  { %2699 = vmatmul.mubr.msk.bf16.vlgmr.msra.gmra.mxu0 %vm273_vm2, %v3133_v7  ;;  %2743 = vmatmul.mubr.msk.bf16.vlgmr.msra.gmra.mxu1 %vm273_vm2, %v3134_v8  ;;  %v3177_v58 = vld [vmem:[#allocation2 + $0x50] sm:$0xff]   ;;  %v3178_v59 = vld [vmem:[#allocation2 + $0x38] sm:$0xff]   ;;  %v3180_v61 = vld [vmem:[#allocation2 + $0x40] sm:$0xff]  }
  0x44   :  { %2843 = vmatpush3.bf16.msra.mxu0 %v1028_v10  ;;  %2702 = vmatprep.mubr.msk.bf16.mxu0 %vm3373_vm0, %v3372_v0  ;;  %v3179_v60 = vld [vmem:[#allocation2 + $0x58] sm:$0xff]   ;;  %v3181_v62 = vld [vmem:[#allocation2 + $0x60] sm:$0xff]   ;;  %v3182_v63 = vld [vmem:[#allocation2 + $0x48] sm:$0xff]  }
  0x45   :  { %2746 = vmatprep.mubr.msk.bf16.mxu1 %vm3373_vm0, %v3372_v0  ;;  %2844 = vmatprep.subr.bf16.mxu0 %v3372_v0  ;;  %v3183_v1 = vld [vmem:[#allocation2 + $0x68] sm:$0xff]   ;;  %v3184_v2 = vld [vmem:[#allocation2 + $0x50] sm:$0xff]   ;;  %v3188_v4 = vld [vmem:[#allocation2 + $0x58] sm:$0xff]  }
  0x46   :  { %2767 = vmatpush3.bf16.msra.mxu1 %v656_v11  ;;  %v3187_v3 = vld [vmem:[#allocation2 + $0x70] sm:$0xff]   ;;  %v3189_v5 = vld [vmem:[#allocation2 + $0x78] sm:$0xff]   ;;  %v3190_v6 = vld [vmem:[#allocation2 + $0x60] sm:$0xff]  }
  0x47   :  { %2768 = vmatprep.subr.bf16.mxu1 %v3372_v0  ;;  %v3191_v7 = vld [vmem:[#allocation2 + $0x80] sm:$0xff]   ;;  %v3192_v8 = vld [vmem:[#allocation2 + $0x68] sm:$0xff]   ;;  %v3194_v9 = vld [vmem:[#allocation2 + $0x70] sm:$0xff]  }
  0x48   :  { %2845 = vmatpush3.bf16.msra.mxu0 %v3140_v12  ;;  %v3195_v10 = vld [vmem:[#allocation2 + $0x18] sm:$0xff]   ;;  %v3198_v12 = vld [vmem:[#allocation2 + $0x20] sm:$0xff]  }
  0x49   :  { %2846 = vmatprep.subr.bf16.mxu0 %v3372_v0  ;;  %v3197_v11 = vld [vmem:[#allocation2 + $0x78] sm:$0xff]  }
  0x4a   :  { %2769 = vmatpush3.bf16.msra.mxu1 %v3146_v14 }
  0x4b   :  { %2703 = vmatmul.mubr.msk.bf16.gmra.mxu0 %vm273_vm2, %v3136_v13  ;;  %2747 = vmatmul.mubr.msk.bf16.gmra.mxu1 %vm273_vm2, %v3137_v15 }
  0x4c   :  { %2706 = vmatprep.mubr.msk.bf16.mxu0 %vm3373_vm0, %v3372_v0  ;;  %2750 = vmatprep.mubr.msk.bf16.mxu1 %vm3373_vm0, %v3372_v0 }
  0x4d   :  { %2770 = vmatprep.subr.bf16.mxu1 %v3372_v0  ;;  %2847 = vmatpush3.bf16.msra.mxu0 %v3151_v16 }
  0x4e   :  { %2771 = vmatpush3.bf16.msra.mxu1 %v3149_v17  ;;  %2848 = vmatprep.subr.bf16.mxu0 %v3372_v0 }
  0x4f   :  { %2772 = vmatprep.subr.bf16.mxu1 %v3372_v0 }
  0x51   :  { %2849 = vmatpush3.bf16.msra.mxu0 %v3158_v19  ;;  %v3199_v19 = vld [vmem:[#allocation2 + $0x80] sm:$0xff]  }
  0x52   :  { %2773 = vmatpush3.bf16.msra.mxu1 %v3150_v20  ;;  %2994 = vmatprep.subr.bf16.mxu0 %v3372_v0  ;;  %v3200_v20 = vld [vmem:[#allocation2 + $0x28] sm:$0xff]  }
  0x53   :  { %2707 = vmatmul.mubr.msk.bf16.gmra.mxu0 %vm273_vm2, %v3138_v18  ;;  %2751 = vmatmul.mubr.msk.bf16.gmra.mxu1 %vm273_vm2, %v3139_v21 }
  0x54   :  { %2710 = vmatprep.mubr.msk.bf16.mxu0 %vm3373_vm0, %v3372_v0  ;;  %2754 = vmatprep.mubr.msk.bf16.mxu1 %vm3373_vm0, %v3372_v0 }
  0x55   :  { %2918 = vmatprep.subr.bf16.mxu1 %v3372_v0 }
  0x5b   :  { %2711 = vmatmul.mubr.msk.bf16.gmra.mxu0 %vm273_vm2, %v3141_v22  ;;  %2755 = vmatmul.mubr.msk.bf16.gmra.mxu1 %vm273_vm2, %v3142_v23 }
  0x5c   :  { %2714 = vmatprep.mubr.msk.bf16.mxu0 %vm3373_vm0, %v3372_v0  ;;  %2758 = vmatprep.mubr.msk.bf16.mxu1 %vm3373_vm0, %v3372_v0 }
  0x63   :  { %2715 = vmatmul.mubr.msk.bf16.gmra.mxu0 %vm273_vm2, %v3143_v24  ;;  %2759 = vmatmul.mubr.msk.bf16.gmra.mxu1 %vm273_vm2, %v3144_v25 }
  0x64   :  { %2718 = vmatprep.mubr.msk.bf16.mxu0 %vm3373_vm0, %v3372_v0  ;;  %2762 = vmatprep.mubr.msk.bf16.mxu1 %vm3373_vm0, %v3372_v0 }
  0x6b   :  { %2719 = vmatmul.mubr.msk.bf16.gmra.mxu0 %vm273_vm2, %v3147_v26  ;;  %2763 = vmatmul.mubr.msk.bf16.gmra.mxu1 %vm273_vm2, %v3148_v27 }
  0x6c   :  { %2722 = vmatprep.mubr.msk.bf16.mxu0 %vm3373_vm0, %v3372_v0  ;;  %2774 = vmatprep.mubr.msk.bf16.mxu1 %vm3373_vm0, %v3372_v0 }
  0x73   :  { %2723 = vmatmul.mubr.msk.bf16.gmra.mxu0 %vm273_vm2, %v3152_v29  ;;  %2775 = vmatmul.mubr.msk.bf16.vlgmr.msra.gmra.mxu1 %vm273_vm2, %v3153_v30  ;;  %v3201_v29 = vld [vmem:[#allocation2 + $0x88] sm:$0xff]   ;;  %v3202_v30 = vld [vmem:[#allocation2 + $0x30] sm:$0xff]  }
  0x74   :  { %2726 = vmatprep.mubr.msk.bf16.mxu0 %vm3373_vm0, %v3372_v0  ;;  %2778 = vmatprep.mubr.msk.bf16.mxu1 %vm3373_vm0, %v3372_v0 }
  0x75   :  { %2919 = vmatpush3.bf16.msra.mxu1 %v1434_v31 }
  0x76   :  { %2920 = vmatprep.subr.bf16.mxu1 %v3372_v0 }
  0x79   :  { %2921 = vmatpush3.bf16.msra.mxu1 %v3175_v32 }
  0x7a   :  { %2922 = vmatprep.subr.bf16.mxu1 %v3372_v0 }
  0x7b   :  { %2727 = vmatmul.mubr.msk.bf16.gmra.mxu0 %vm273_vm2, %v3154_v33  ;;  %2779 = vmatmul.mubr.msk.bf16.gmra.mxu1 %vm273_vm2, %v3155_v34 }
  0x7c   :  { %2730 = vmatprep.mubr.msk.bf16.mxu0 %vm3373_vm0, %v3372_v0  ;;  %2782 = vmatprep.mubr.msk.bf16.mxu1 %vm3373_vm0, %v3372_v0 }
  0x7d   :  { %2923 = vmatpush3.bf16.msra.mxu1 %v3185_v35 }
  0x7e   :  { %2924 = vmatprep.subr.bf16.mxu1 %v3372_v0 }
  0x81   :  { %2925 = vmatpush3.bf16.msra.mxu1 %v3193_v36 }
  0x82   :  { %3070 = vmatprep.subr.bf16.mxu1 %v3372_v0 }
  0x83   :  { %2731 = vmatmul.mubr.msk.bf16.gmra.mxu0 %vm273_vm2, %v3156_v37  ;;  %2783 = vmatmul.mubr.msk.bf16.gmra.mxu1 %vm273_vm2, %v3157_v38 }
  0x84   :  { %2734 = vmatprep.mubr.msk.bf16.mxu0 %vm3373_vm0, %v3372_v0  ;;  %2786 = vmatprep.mubr.msk.bf16.mxu1 %vm3373_vm0, %v3372_v0 }
  0x8b   :  { %2735 = vmatmul.mubr.msk.bf16.gmra.mxu0 %vm273_vm2, %v3159_v39  ;;  %2787 = vmatmul.mubr.msk.bf16.gmra.mxu1 %vm273_vm2, %v3160_v40  ;;  %v3203_v39 = vld [vmem:[#allocation2 + $0x90] sm:$0xff]   ;;  %v3204_v40 = vld [vmem:[#allocation2 + $0x38] sm:$0xff]  }
  0x8c   :  { %2738 = vmatprep.mubr.msk.bf16.mxu0 %vm3373_vm0, %v3372_v0  ;;  %2790 = vmatprep.mubr.msk.bf16.mxu1 %vm3373_vm0, %v3372_v0 }
  0x93   :  { %2739 = vmatmul.mubr.msk.bf16.gmra.mxu0 %vm273_vm2, %v3161_v41  ;;  %2791 = vmatmul.mubr.msk.bf16.gmra.mxu1 %vm273_vm2, %v3162_v42 }
  0x94   :  { %2794 = vmatprep.mubr.msk.bf16.mxu1 %vm3373_vm0, %v3372_v0  ;;  %2850 = vmatprep.mubr.msk.bf16.mxu0 %vm3373_vm0, %v3372_v0 }
  0x9b   :  { %2795 = vmatmul.mubr.msk.bf16.gmra.mxu1 %vm273_vm2, %v3164_v44  ;;  %2851 = vmatmul.mubr.msk.bf16.vlgmr.msra.gmra.mxu0 %vm273_vm2, %v3165_v45 }
  0x9c   :  { %2995 = vmatpush3.bf16.msra.mxu0 %v1840_v46  ;;  %2798 = vmatprep.mubr.msk.bf16.mxu1 %vm3373_vm0, %v3372_v0 }
  0x9d   :  { %2854 = vmatprep.mubr.msk.bf16.mxu0 %vm3373_vm0, %v3372_v0  ;;  %2996 = vmatprep.subr.bf16.mxu0 %v3372_v0 }
  0xa0   :  { %2997 = vmatpush3.bf16.msra.mxu0 %v3176_v47 }
  0xa1   :  { %2998 = vmatprep.subr.bf16.mxu0 %v3372_v0 }
  0xa3   :  { %2799 = vmatmul.mubr.msk.bf16.gmra.mxu1 %vm273_vm2, %v3167_v48  ;;  %2855 = vmatmul.mubr.msk.bf16.gmra.mxu0 %vm273_vm2, %v3168_v49  ;;  %v3205_v49 = vld [vmem:[#allocation2 + $0x40] sm:$0xff]  }
  0xa4   :  { %2802 = vmatprep.mubr.msk.bf16.mxu1 %vm3373_vm0, %v3372_v0  ;;  %2858 = vmatprep.mubr.msk.bf16.mxu0 %vm3373_vm0, %v3372_v0 }
  0xa5   :  { %2999 = vmatpush3.bf16.msra.mxu0 %v3186_v50  ;;  %v3206_v50 = vld [vmem:[#allocation2 + $0x20] sm:$0xff]  }
  0xa6   :  { %3000 = vmatprep.subr.bf16.mxu0 %v3372_v0 }
  0xa9   :  { %3001 = vmatpush3.bf16.msra.mxu0 %v3196_v51 }
  0xab   :  { %2803 = vmatmul.mubr.msk.bf16.gmra.mxu1 %vm273_vm2, %v3169_v52  ;;  %2859 = vmatmul.mubr.msk.bf16.gmra.mxu0 %vm273_vm2, %v3170_v53 }
  0xac   :  { %2806 = vmatprep.mubr.msk.bf16.mxu1 %vm3373_vm0, %v3372_v0  ;;  %2862 = vmatprep.mubr.msk.bf16.mxu0 %vm3373_vm0, %v3372_v0 }
  0xb3   :  { %2807 = vmatmul.mubr.msk.bf16.gmra.mxu1 %vm273_vm2, %v3171_v54  ;;  %2863 = vmatmul.mubr.msk.bf16.gmra.mxu0 %vm273_vm2, %v3172_v55 }
  0xb4   :  { %2810 = vmatprep.mubr.msk.bf16.mxu1 %vm3373_vm0, %v3372_v0  ;;  %2866 = vmatprep.mubr.msk.bf16.mxu0 %vm3373_vm0, %v3372_v0 }
  0xbb   :  { %2811 = vmatmul.mubr.msk.bf16.gmra.mxu1 %vm273_vm2, %v3173_v56  ;;  %2867 = vmatmul.mubr.msk.bf16.gmra.mxu0 %vm273_vm2, %v3174_v57 }
  0xbc   :  { %2814 = vmatprep.mubr.msk.bf16.mxu1 %vm3373_vm0, %v3372_v0  ;;  %2870 = vmatprep.mubr.msk.bf16.mxu0 %vm3373_vm0, %v3372_v0 }
  0xc3   :  { %2815 = vmatmul.mubr.msk.bf16.gmra.mxu1 %vm273_vm2, %v3177_v58  ;;  %2871 = vmatmul.mubr.msk.bf16.gmra.mxu0 %vm273_vm2, %v3178_v59  ;;  %v3207_v59 = vld [vmem:[#allocation2 + $0x48] sm:$0xff]  }
  0xc4   :  { %2818 = vmatprep.mubr.msk.bf16.mxu1 %vm3373_vm0, %v3372_v0  ;;  %2874 = vmatprep.mubr.msk.bf16.mxu0 %vm3373_vm0, %v3372_v0 }
  0xcb   :  { %2819 = vmatmul.mubr.msk.bf16.gmra.mxu1 %vm273_vm2, %v3179_v60  ;;  %2875 = vmatmul.mubr.msk.bf16.gmra.mxu0 %vm273_vm2, %v3180_v61  ;;  %v3208_v60 = vld [vmem:[#allocation2 + $0x28] sm:$0xff]  }
  0xcc   :  { %2822 = vmatprep.mubr.msk.bf16.mxu1 %vm3373_vm0, %v3372_v0  ;;  %2878 = vmatprep.mubr.msk.bf16.mxu0 %vm3373_vm0, %v3372_v0 }
  0xd3   :  { %2823 = vmatmul.mubr.msk.bf16.gmra.mxu1 %vm273_vm2, %v3181_v62  ;;  %2879 = vmatmul.mubr.msk.bf16.gmra.mxu0 %vm273_vm2, %v3182_v63 }
  0xd4   :  { %2826 = vmatprep.mubr.msk.bf16.mxu1 %vm3373_vm0, %v3372_v0  ;;  %2882 = vmatprep.mubr.msk.bf16.mxu0 %vm3373_vm0, %v3372_v0 }
  0xdb   :  { %2827 = vmatmul.mubr.msk.bf16.gmra.mxu1 %vm273_vm2, %v3183_v1  ;;  %2883 = vmatmul.mubr.msk.bf16.gmra.mxu0 %vm273_vm2, %v3184_v2 }
  0xdc   :  { %2830 = vmatprep.mubr.msk.bf16.mxu1 %vm3373_vm0, %v3372_v0  ;;  %2886 = vmatprep.mubr.msk.bf16.mxu0 %vm3373_vm0, %v3372_v0 }
  0xe3   :  { %2831 = vmatmul.mubr.msk.bf16.gmra.mxu1 %vm273_vm2, %v3187_v3  ;;  %2887 = vmatmul.mubr.msk.bf16.gmra.mxu0 %vm273_vm2, %v3188_v4 }
  0xe4   :  { %2834 = vmatprep.mubr.msk.bf16.mxu1 %vm3373_vm0, %v3372_v0  ;;  %2890 = vmatprep.mubr.msk.bf16.mxu0 %vm3373_vm0, %v3372_v0 }
  0xeb   :  { %2835 = vmatmul.mubr.msk.bf16.gmra.mxu1 %vm273_vm2, %v3189_v5  ;;  %2891 = vmatmul.mubr.msk.bf16.gmra.mxu0 %vm273_vm2, %v3190_v6  ;;  %v3209_v6 = vld [vmem:[#allocation2 + $0x50] sm:$0xff]  }
  0xec   :  { %2838 = vmatprep.mubr.msk.bf16.mxu1 %vm3373_vm0, %v3372_v0  ;;  %2894 = vmatprep.mubr.msk.bf16.mxu0 %vm3373_vm0, %v3372_v0 }
  0xf3   :  { %2839 = vmatmul.mubr.msk.bf16.gmra.mxu1 %vm273_vm2, %v3191_v7  ;;  %2895 = vmatmul.mubr.msk.bf16.gmra.mxu0 %vm273_vm2, %v3192_v8  ;;  %v3210_v7 = vld [vmem:[#allocation2 + $0x30] sm:$0xff]  }
  0xf4   :  { %2898 = vmatprep.mubr.msk.bf16.mxu0 %vm3373_vm0, %v3372_v0  ;;  %2926 = vmatprep.mubr.msk.bf16.mxu1 %vm3373_vm0, %v3372_v0 }
  0xfb   :  { %2899 = vmatmul.mubr.msk.bf16.gmra.mxu0 %vm273_vm2, %v3194_v9  ;;  %2927 = vmatmul.mubr.msk.bf16.vlgmr.msra.gmra.mxu1 %vm273_vm2, %v3195_v10 }
  0xfc   :  { %2902 = vmatprep.mubr.msk.bf16.mxu0 %vm3373_vm0, %v3372_v0  ;;  %2930 = vmatprep.mubr.msk.bf16.mxu1 %vm3373_vm0, %v3372_v0 }
 0x103   :  { %v3619_v13 = vpop.f32.mrf.mxu0  ;;  %v3621_v14 = vpop.f32.mrf.mxu1  ;;  %2903 = vmatmul.mubr.msk.bf16.gmra.mxu0 %vm273_vm2, %v3197_v11  ;;  %2931 = vmatmul.mubr.msk.bf16.gmra.mxu1 %vm273_vm2, %v3198_v12 }
 0x104   :  { %2906 = vmatprep.mubr.msk.bf16.mxu0 %vm3373_vm0, %v3372_v0  ;;  %2934 = vmatprep.mubr.msk.bf16.mxu1 %vm3373_vm0, %v3372_v0 }
 0x105   :  { %v2700_v15 = vpop.f32.mrf.mxu0  ;;  %v2744_v16 = vpop.f32.mrf.mxu1 }
 0x107   :  { %v3629_v17 = vpop.f32.mrf.mxu0  ;;  %v3631_v18 = vpop.f32.mrf.mxu1 }
 0x109   :  { %v2701_v21 = vpop.f32.mrf.mxu0  ;;  %v2745_v22 = vpop.f32.mrf.mxu1 }
 0x10a   :  { %v3211_v21 = vld [vmem:[#allocation2 + $0x58] sm:$0xff]  }
 0x10b   :  { %v3633_v23 = vpop.f32.mrf.mxu0  ;;  %v3635_v24 = vpop.f32.mrf.mxu1  ;;  %2907 = vmatmul.mubr.msk.bf16.gmra.mxu0 %vm273_vm2, %v3199_v19  ;;  %2935 = vmatmul.mubr.msk.bf16.gmra.mxu1 %vm273_vm2, %v3200_v20  ;;  %v3212_v22 = vld [vmem:[#allocation2 + $0x38] sm:$0xff]  }
 0x10c   :  { %2910 = vmatprep.mubr.msk.bf16.mxu0 %vm3373_vm0, %v3372_v0  ;;  %2938 = vmatprep.mubr.msk.bf16.mxu1 %vm3373_vm0, %v3372_v0 }
 0x10d   :  { %v2704_v25 = vpop.f32.mrf.mxu0  ;;  %v2748_v26 = vpop.f32.mrf.mxu1 }
 0x10f   :  { %v3643_v27 = vpop.f32.mrf.mxu0  ;;  %v3645_v28 = vpop.f32.mrf.mxu1 }
 0x111   :  { %v2705_v31 = vpop.f32.mrf.mxu0  ;;  %v2749_v32 = vpop.f32.mrf.mxu1 }
 0x113   :  { %v3647_v33 = vpop.f32.mrf.mxu0  ;;  %v3649_v34 = vpop.f32.mrf.mxu1  ;;  %2911 = vmatmul.mubr.msk.bf16.gmra.mxu0 %vm273_vm2, %v3201_v29  ;;  %2939 = vmatmul.mubr.msk.bf16.gmra.mxu1 %vm273_vm2, %v3202_v30 }
 0x114   :  { %2914 = vmatprep.mubr.msk.bf16.mxu0 %vm3373_vm0, %v3372_v0  ;;  %2942 = vmatprep.mubr.msk.bf16.mxu1 %vm3373_vm0, %v3372_v0 }
 0x115   :  { %v2708_v35 = vpop.f32.mrf.mxu0  ;;  %v2752_v36 = vpop.f32.mrf.mxu1 }
 0x117   :  { %v3657_v37 = vpop.f32.mrf.mxu0  ;;  %v3659_v38 = vpop.f32.mrf.mxu1 }
 0x119   :  { %v2709_v41 = vpop.f32.mrf.mxu0  ;;  %v2753_v42 = vpop.f32.mrf.mxu1 }
 0x11b   :  { %v3661_v43 = vpop.f32.mrf.mxu0  ;;  %v3663_v44 = vpop.f32.mrf.mxu1  ;;  %2915 = vmatmul.mubr.msk.bf16.gmra.mxu0 %vm273_vm2, %v3203_v39  ;;  %2943 = vmatmul.mubr.msk.bf16.gmra.mxu1 %vm273_vm2, %v3204_v40  ;;  %v3213_v39 = vld [vmem:[#allocation2 + $0x60] sm:$0xff]  }
 0x11c   :  { %2946 = vmatprep.mubr.msk.bf16.mxu1 %vm3373_vm0, %v3372_v0  ;;  %3002 = vmatprep.mubr.msk.bf16.mxu0 %vm3373_vm0, %v3372_v0  ;;  %v3214_v40 = vld [vmem:[#allocation2 + $0x40] sm:$0xff]  }
 0x11d   :  { %v2712_v45 = vpop.f32.mrf.mxu0  ;;  %v2756_v46 = vpop.f32.mrf.mxu1 }
 0x11f   :  { %v3671_v47 = vpop.f32.mrf.mxu0  ;;  %v3673_v48 = vpop.f32.mrf.mxu1 }
 0x121   :  { %v2713_v51 = vpop.f32.mrf.mxu0  ;;  %v2757_v52 = vpop.f32.mrf.mxu1 }
 0x123   :  { %v3675_v53 = vpop.f32.mrf.mxu0  ;;  %v3677_v54 = vpop.f32.mrf.mxu1  ;;  %2947 = vmatmul.mubr.msk.bf16.gmra.mxu1 %vm273_vm2, %v3205_v49  ;;  %3003 = vmatmul.mubr.msk.bf16.vlgmr.msra.gmra.mxu0 %vm273_vm2, %v3206_v50 }
 0x124   :  { %2950 = vmatprep.mubr.msk.bf16.mxu1 %vm3373_vm0, %v3372_v0  ;;  %3006 = vmatprep.mubr.msk.bf16.mxu0 %vm3373_vm0, %v3372_v0 }
 0x125   :  { %v2716_v55 = vpop.f32.mrf.mxu0  ;;  %v2760_v56 = vpop.f32.mrf.mxu1 }
 0x126   :  { %v3215_v55 = vld [vmem:[#allocation2 + $0x68] sm:$0xff]  }
 0x127   :  { %v3685_v57 = vpop.f32.mrf.mxu0  ;;  %v3687_v58 = vpop.f32.mrf.mxu1  ;;  %v3216_v56 = vld [vmem:[#allocation2 + $0x48] sm:$0xff]  }
 0x129   :  { %v2717_v61 = vpop.f32.mrf.mxu0  ;;  %v2761_v62 = vpop.f32.mrf.mxu1 }
 0x12b   :  { %v3689_v63 = vpop.f32.mrf.mxu0  ;;  %v3691_v1 = vpop.f32.mrf.mxu1  ;;  %2951 = vmatmul.mubr.msk.bf16.gmra.mxu1 %vm273_vm2, %v3207_v59  ;;  %3007 = vmatmul.mubr.msk.bf16.gmra.mxu0 %vm273_vm2, %v3208_v60 }
 0x12c   :  { %2954 = vmatprep.mubr.msk.bf16.mxu1 %vm3373_vm0, %v3372_v0  ;;  %3010 = vmatprep.mubr.msk.bf16.mxu0 %vm3373_vm0, %v3372_v0 }
 0x12d   :  { %v2720_v2 = vpop.f32.mrf.mxu0  ;;  %v2764_v3 = vpop.f32.mrf.mxu1 }
 0x12f   :  { %v3699_v4 = vpop.f32.mrf.mxu0  ;;  %v3701_v5 = vpop.f32.mrf.mxu1 }
 0x131   :  { %v2721_v8 = vpop.f32.mrf.mxu0  ;;  %v2765_v9 = vpop.f32.mrf.mxu1 }
 0x132   :  { %v3217_v8 = vld [vmem:[#allocation2 + $0x70] sm:$0xff]  }
 0x133   :  { %v3703_v10 = vpop.f32.mrf.mxu0  ;;  %v692_v11 = vpop.f32.mrf.mxu1  ;;  %2955 = vmatmul.mubr.msk.bf16.gmra.mxu1 %vm273_vm2, %v3209_v6  ;;  %3011 = vmatmul.mubr.msk.bf16.gmra.mxu0 %vm273_vm2, %v3210_v7  ;;  %v3218_v9 = vld [vmem:[#allocation2 + $0x50] sm:$0xff]  }
 0x134   :  { %v3708_v12 = vadd.f32 %v692_v11, %v3619_v13  ;;  %2958 = vmatprep.mubr.msk.bf16.mxu1 %vm3373_vm0, %v3372_v0  ;;  %3014 = vmatprep.mubr.msk.bf16.mxu0 %vm3373_vm0, %v3372_v0 }
 0x135   :  { %v2724_v15 = vpop.f32.mrf.mxu0  ;;  %v2776_v16 = vpop.f32.mrf.mxu1 }
 0x137   :  { %v3714_v19 = vpop.f32.mrf.mxu0  ;;  %v695_v20 = vpop.f32.mrf.mxu1 }
 0x138   :  { %v3717_v25 = vadd.f32 %v695_v20, %v3629_v17 }
 0x139   :  { %v2725_v26 = vpop.f32.mrf.mxu0  ;;  %v2777_v29 = vpop.f32.mrf.mxu1 }
 0x13b   :  { %v3719_v13 = vpop.f32.mrf.mxu0  ;;  %v700_v30 = vpop.f32.mrf.mxu1  ;;  %2959 = vmatmul.mubr.msk.bf16.gmra.mxu1 %vm273_vm2, %v3211_v21  ;;  %3015 = vmatmul.mubr.msk.bf16.gmra.mxu0 %vm273_vm2, %v3212_v22 }
 0x13c   :  { %v3724_v31 = vadd.f32 %v700_v30, %v3633_v23  ;;  %2962 = vmatprep.mubr.msk.bf16.mxu1 %vm3373_vm0, %v3372_v0  ;;  %3018 = vmatprep.mubr.msk.bf16.mxu0 %vm3373_vm0, %v3372_v0  ;;  %v3219_v30 = vld [vmem:[#allocation2 + $0x78] sm:$0xff]  }
 0x13d   :  { %v2728_v17 = vpop.f32.mrf.mxu0  ;;  %v2780_v32 = vpop.f32.mrf.mxu1 }
 0x13e   :  { %v3220_v17 = vld [vmem:[#allocation2 + $0x58] sm:$0xff]  }
 0x13f   :  { %v3730_v35 = vpop.f32.mrf.mxu0  ;;  %v703_v36 = vpop.f32.mrf.mxu1 }
 0x140   :  { %v3733_v41 = vadd.f32 %v703_v36, %v3643_v27 }
 0x141   :  { %v2729_v42 = vpop.f32.mrf.mxu0  ;;  %v2781_v45 = vpop.f32.mrf.mxu1 }
 0x143   :  { %v3735_v23 = vpop.f32.mrf.mxu0  ;;  %v708_v46 = vpop.f32.mrf.mxu1  ;;  %2963 = vmatmul.mubr.msk.bf16.gmra.mxu1 %vm273_vm2, %v3213_v39  ;;  %3019 = vmatmul.mubr.msk.bf16.gmra.mxu0 %vm273_vm2, %v3214_v40 }
 0x144   :  { %v3740_v49 = vadd.f32 %v708_v46, %v3647_v33  ;;  %2966 = vmatprep.mubr.msk.bf16.mxu1 %vm3373_vm0, %v3372_v0  ;;  %3022 = vmatprep.mubr.msk.bf16.mxu0 %vm3373_vm0, %v3372_v0 }
 0x145   :  { %v2732_v27 = vpop.f32.mrf.mxu0  ;;  %v2784_v50 = vpop.f32.mrf.mxu1 }
 0x147   :  { %v3746_v51 = vpop.f32.mrf.mxu0  ;;  %v711_v52 = vpop.f32.mrf.mxu1 }
 0x148   :  { %v3749_v59 = vadd.f32 %v711_v52, %v3657_v37  ;;  %v3221_v52 = vld [vmem:[#allocation2 + $0x80] sm:$0xff]  }
 0x149   :  { %v2733_v60 = vpop.f32.mrf.mxu0  ;;  %v2785_v61 = vpop.f32.mrf.mxu1 }
 0x14b   :  { %v3751_v33 = vpop.f32.mrf.mxu0  ;;  %v716_v62 = vpop.f32.mrf.mxu1  ;;  %2967 = vmatmul.mubr.msk.bf16.gmra.mxu1 %vm273_vm2, %v3215_v55  ;;  %3023 = vmatmul.mubr.msk.bf16.gmra.mxu0 %vm273_vm2, %v3216_v56  ;;  %v3222_v55 = vld [vmem:[#allocation2 + $0x60] sm:$0xff]  }
 0x14c   :  { %v3756_v2 = vadd.f32 %v716_v62, %v3661_v43  ;;  %2970 = vmatprep.mubr.msk.bf16.mxu1 %vm3373_vm0, %v3372_v0  ;;  %3026 = vmatprep.mubr.msk.bf16.mxu0 %vm3373_vm0, %v3372_v0 }
 0x14d   :  { %v2736_v37 = vpop.f32.mrf.mxu0  ;;  %v2788_v3 = vpop.f32.mrf.mxu1 }
 0x14f   :  { %v3762_v6 = vpop.f32.mrf.mxu0  ;;  %v719_v7 = vpop.f32.mrf.mxu1 }
 0x150   :  { %v3765_v11 = vadd.f32 %v719_v7, %v3671_v47 }
 0x151   :  { %v2737_v15 = vpop.f32.mrf.mxu0  ;;  %v2789_v16 = vpop.f32.mrf.mxu1 }
 0x152   :  { %v3224_v15 = vld [vmem:[#allocation2 + $0x68] sm:$0xff]  }
 0x153   :  { %v3767_v43 = vpop.f32.mrf.mxu0  ;;  %v724_v20 = vpop.f32.mrf.mxu1  ;;  %2971 = vmatmul.mubr.msk.bf16.gmra.mxu1 %vm273_vm2, %v3217_v8  ;;  %3027 = vmatmul.mubr.msk.bf16.gmra.mxu0 %vm273_vm2, %v3218_v9  ;;  %v3223_v9 = vld [vmem:[#allocation2 + $0x88] sm:$0xff]  }
 0x154   :  { %v3772_v21 = vadd.f32 %v724_v20, %v3675_v53  ;;  %2974 = vmatprep.mubr.msk.bf16.mxu1 %vm3373_vm0, %v3372_v0  ;;  %3030 = vmatprep.mubr.msk.bf16.mxu0 %vm3373_vm0, %v3372_v0 }
 0x155   :  { %v2740_v47 = vpop.f32.mrf.mxu0  ;;  %v2792_v22 = vpop.f32.mrf.mxu1 }
 0x157   :  { %v3778_v26 = vpop.f32.mrf.mxu0  ;;  %v727_v29 = vpop.f32.mrf.mxu1 }
 0x158   :  { %v3781_v32 = vadd.f32 %v727_v29, %v3685_v57 }
 0x159   :  { %v2741_v36 = vpop.f32.mrf.mxu0  ;;  %v2793_v39 = vpop.f32.mrf.mxu1 }
 0x15b   :  { %v732_v53 = vpop.f32.mrf.mxu1  ;;  %v1064_v40 = vpop.f32.mrf.mxu0  ;;  %2975 = vmatmul.mubr.msk.bf16.gmra.mxu1 %vm273_vm2, %v3219_v30  ;;  %3031 = vmatmul.mubr.msk.bf16.gmra.mxu0 %vm273_vm2, %v3220_v17  ;;  %v3234_v17 = vld [vmem:[#allocation7 + $0x38] sm:$0xff]  }
 0x15c   :  { %v3786_v42 = vadd.f32 %v732_v53, %v3689_v63  ;;  %v3789_v45 = vadd.f32 %v1064_v40, %v3708_v12  ;;  %2978 = vmatprep.mubr.msk.bf16.mxu1 %vm3373_vm0, %v3372_v0  ;;  %3034 = vmatprep.mubr.msk.bf16.mxu0 %vm3373_vm0, %v3372_v0  ;;  %v3225_v53 = vld [vmem:[#allocation2 + $0x90] sm:$0xff]  }
 0x15d   :  { %v2796_v57 = vpop.f32.mrf.mxu1  ;;  %v2852_v46 = vpop.f32.mrf.mxu0  ;;  %v3226_v40 = vld [vmem:[#allocation2 + $0x70] sm:$0xff]   ;;  %3071 = vmatpush3.bf16.msra.mxu1 %v3234_v17 }
 0x15e   :  { %3072 = vmatprep.subr.bf16.mxu1 %v3372_v0 }
 0x15f   :  { %v735_v27 = vpop.f32.mrf.mxu1  ;;  %v1067_v50 = vpop.f32.mrf.mxu0 }
 0x160   :  { %v3796_v56 = vadd.f32 %v735_v27, %v3699_v4  ;;  %v3799_v63 = vadd.f32 %v1067_v50, %v3717_v25 }
 0x161   :  { %v2797_v12 = vpop.f32.mrf.mxu1  ;;  %v2853_v60 = vpop.f32.mrf.mxu0 }
 0x163   :  { %v740_v61 = vpop.f32.mrf.mxu1  ;;  %v1072_v62 = vpop.f32.mrf.mxu0  ;;  %2979 = vmatmul.mubr.msk.bf16.gmra.mxu1 %vm273_vm2, %v3221_v52  ;;  %3035 = vmatmul.mubr.msk.bf16.gmra.mxu0 %vm273_vm2, %v3222_v55 }
 0x164   :  { %v3804_v37 = vadd.f32 %v740_v61, %v3703_v10  ;;  %v3807_v3 = vadd.f32 %v1072_v62, %v3724_v31  ;;  %2982 = vmatprep.mubr.msk.bf16.mxu1 %vm3373_vm0, %v3372_v0  ;;  %3038 = vmatprep.mubr.msk.bf16.mxu0 %vm3373_vm0, %v3372_v0  ;;  %v3227_v61 = vld [vmem:[#allocation2 + $0x98] sm:$0xff]  }
 0x165   :  { %v2800_v4 = vpop.f32.mrf.mxu1  ;;  %v2856_v25 = vpop.f32.mrf.mxu0  ;;  %v3228_v62 = vld [vmem:[#allocation2 + $0x78] sm:$0xff]  }
 0x167   :  { %v743_v7 = vpop.f32.mrf.mxu1  ;;  %v1075_v8 = vpop.f32.mrf.mxu0 }
 0x168   :  { %v3814_v16 = vadd.f32 %v743_v7, %v3714_v19  ;;  %v3817_v10 = vadd.f32 %v1075_v8, %v3733_v41 }
 0x169   :  { %v2801_v31 = vpop.f32.mrf.mxu1  ;;  %v2857_v20 = vpop.f32.mrf.mxu0 }
 0x16a   :  { %v3235_v31 = vld [vmem:[#allocation7 + $0x30] sm:$0xff]  }
 0x16b   :  { %v748_v47 = vpop.f32.mrf.mxu1  ;;  %v1080_v22 = vpop.f32.mrf.mxu0  ;;  %2983 = vmatmul.mubr.msk.bf16.gmra.mxu1 %vm273_vm2, %v3223_v9  ;;  %3039 = vmatmul.mubr.msk.bf16.gmra.mxu0 %vm273_vm2, %v3224_v15 }
 0x16c   :  { %v3822_v29 = vadd.f32 %v748_v47, %v3719_v13  ;;  %v3825_v30 = vadd.f32 %v1080_v22, %v3740_v49  ;;  %2986 = vmatprep.mubr.msk.bf16.mxu1 %vm3373_vm0, %v3372_v0  ;;  %3042 = vmatprep.mubr.msk.bf16.mxu0 %vm3373_vm0, %v3372_v0  ;;  %v3229_v22 = vld [vmem:[#allocation2 + $0x80] sm:$0xff]  }
 0x16d   :  { %v2804_v19 = vpop.f32.mrf.mxu1  ;;  %v2860_v41 = vpop.f32.mrf.mxu0  ;;  %3073 = vmatpush3.bf16.msra.mxu1 %v3235_v31 }
 0x16e   :  { %3074 = vmatprep.subr.bf16.mxu1 %v3372_v0 }
 0x16f   :  { %v751_v36 = vpop.f32.mrf.mxu1  ;;  %v1083_v39 = vpop.f32.mrf.mxu0 }
 0x170   :  { %v3832_v13 = vadd.f32 %v751_v36, %v3730_v35  ;;  %v3835_v49 = vadd.f32 %v1083_v39, %v3749_v59 }
 0x171   :  { %v2805_v57 = vpop.f32.mrf.mxu1  ;;  %v2861_v46 = vpop.f32.mrf.mxu0 }
 0x172   :  { %v3230_v46 = vld [vmem:[#allocation2 + $0x88] sm:$0xff]  }
 0x173   :  { %v756_v27 = vpop.f32.mrf.mxu1  ;;  %v1088_v50 = vpop.f32.mrf.mxu0  ;;  %2987 = vmatmul.mubr.msk.bf16.gmra.mxu1 %vm273_vm2, %v3225_v53  ;;  %3043 = vmatmul.mubr.msk.bf16.gmra.mxu0 %vm273_vm2, %v3226_v40 }
 0x174   :  { %v3841_v52 = vadd.f32 %v756_v27, %v3735_v23  ;;  %v3844_v55 = vadd.f32 %v1088_v50, %v3756_v2  ;;  %2990 = vmatprep.mubr.msk.bf16.mxu1 %vm3373_vm0, %v3372_v0  ;;  %3046 = vmatprep.mubr.msk.bf16.mxu0 %vm3373_vm0, %v3372_v0 }
 0x175   :  { %v2808_v35 = vpop.f32.mrf.mxu1  ;;  %v2864_v59 = vpop.f32.mrf.mxu0 }
 0x177   :  { %v759_v12 = vpop.f32.mrf.mxu1  ;;  %v1091_v60 = vpop.f32.mrf.mxu0 }
 0x178   :  { %v3851_v4 = vadd.f32 %v759_v12, %v3746_v51  ;;  %v3854_v23 = vadd.f32 %v1091_v60, %v3765_v11 }
 0x179   :  { %v2809_v2 = vpop.f32.mrf.mxu1  ;;  %v2865_v25 = vpop.f32.mrf.mxu0 }
 0x17b   :  { %v764_v7 = vpop.f32.mrf.mxu1  ;;  %v1096_v8 = vpop.f32.mrf.mxu0  ;;  %2991 = vmatmul.mubr.msk.bf16.gmra.mxu1 %vm273_vm2, %v3227_v61  ;;  %3047 = vmatmul.mubr.msk.bf16.gmra.mxu0 %vm273_vm2, %v3228_v62 }
 0x17c   :  { %v3859_v9 = vadd.f32 %v764_v7, %v3751_v33  ;;  %v3862_v15 = vadd.f32 %v1096_v8, %v3772_v21  ;;  %3050 = vmatprep.mubr.msk.bf16.mxu0 %vm3373_vm0, %v3372_v0  ;;  %3086 = vmatprep.mubr.msk.bf16.mxu1 %vm3373_vm0, %v3372_v0  ;;  %v3236_v8 = vld [vmem:[#allocation7 + $0x28] sm:$0xff]  }
 0x17d   :  { %v2812_v51 = vpop.f32.mrf.mxu1  ;;  %v2868_v11 = vpop.f32.mrf.mxu0  ;;  %3075 = vmatpush3.bf16.msra.mxu1 %v3236_v8 }
 0x17e   :  { %3076 = vmatprep.subr.bf16.mxu1 %v3372_v0 }
 0x17f   :  { %v767_v20 = vpop.f32.mrf.mxu1  ;;  %v1099_v47 = vpop.f32.mrf.mxu0 }
 0x180   :  { %v3869_v19 = vadd.f32 %v767_v20, %v3762_v6  ;;  %v3872_v33 = vadd.f32 %v1099_v47, %v3781_v32 }
 0x181   :  { %v2813_v21 = vpop.f32.mrf.mxu1  ;;  %v2869_v41 = vpop.f32.mrf.mxu0 }
 0x183   :  { %v772_v17 = vpop.f32.mrf.mxu1  ;;  %v1104_v36 = vpop.f32.mrf.mxu0  ;;  %3051 = vmatmul.mubr.msk.bf16.gmra.mxu0 %vm273_vm2, %v3229_v22  ;;  %v3232_v22 = vld [vmem:[#allocation2 + $0x98] sm:$0xff]  }
 0x184   :  { %v3877_v39 = vadd.f32 %v772_v17, %v3767_v43  ;;  %v3880_v53 = vadd.f32 %v1104_v36, %v3786_v42  ;;  %3054 = vmatprep.mubr.msk.bf16.mxu0 %vm3373_vm0, %v3372_v0 }
 0x185   :  { %v2816_v6 = vpop.f32.mrf.mxu1  ;;  %v2872_v32 = vpop.f32.mrf.mxu0 }
 0x187   :  { %v775_v40 = vpop.f32.mrf.mxu1  ;;  %v1107_v57 = vpop.f32.mrf.mxu0 }
 0x188   :  { %v3885_v27 = vadd.f32 %v775_v40, %v3778_v26  ;;  %v3888_v50 = vadd.f32 %v1107_v57, %v3796_v56  ;;  %v3231_v56 = vld [vmem:[#allocation2 + $0x90] sm:$0xff]  }
 0x189   :  { %v2817_v35 = vpop.f32.mrf.mxu1  ;;  %v2873_v43 = vpop.f32.mrf.mxu0 }
 0x18b   :  { %v3890_v59 = vpop.f32.mrf.mxu1  ;;  %v1112_v42 = vpop.f32.mrf.mxu0  ;;  %3055 = vmatmul.mubr.msk.bf16.gmra.mxu0 %vm273_vm2, %v3230_v46 }
 0x18c   :  { %v3894_v12 = vadd.f32 %v1112_v42, %v3804_v37  ;;  %3058 = vmatprep.mubr.msk.bf16.mxu0 %vm3373_vm0, %v3372_v0 }
 0x18d   :  { %v2820_v60 = vpop.f32.mrf.mxu1  ;;  %v2876_v61 = vpop.f32.mrf.mxu0 }
 0x18e   :  { %v3237_v60 = vld [vmem:[#allocation7 + $0x20] sm:$0xff]  }
 0x18f   :  { %v3898_v26 = vpop.f32.mrf.mxu1  ;;  %v1115_v62 = vpop.f32.mrf.mxu0  ;;  %3077 = vmatpush3.bf16.msra.mxu1 %v3237_v60 }
 0x190   :  { %v3901_v2 = vadd.f32 %v1115_v62, %v3814_v16  ;;  %3078 = vmatprep.subr.bf16.mxu1 %v3372_v0 }
 0x191   :  { %v2821_v25 = vpop.f32.mrf.mxu1  ;;  %v2877_v7 = vpop.f32.mrf.mxu0 }
 0x193   :  { %v3903_v51 = vpop.f32.mrf.mxu1  ;;  %v1120_v11 = vpop.f32.mrf.mxu0  ;;  %3059 = vmatmul.mubr.msk.bf16.gmra.mxu0 %vm273_vm2, %v3231_v56 }
 0x194   :  { %v3907_v37 = vadd.f32 %v1120_v11, %v3822_v29  ;;  %3062 = vmatprep.mubr.msk.bf16.mxu0 %vm3373_vm0, %v3372_v0 }
 0x195   :  { %v2824_v31 = vpop.f32.mrf.mxu1  ;;  %v2880_v20 = vpop.f32.mrf.mxu0 }
 0x197   :  { %v3912_v16 = vpop.f32.mrf.mxu1  ;;  %v1123_v47 = vpop.f32.mrf.mxu0 }
 0x198   :  { %v3915_v21 = vadd.f32 %v1123_v47, %v3832_v13  ;;  %v3233_v13 = vld [vmem:[#allocation2 + $0xa0] sm:$0xff]  }
 0x199   :  { %v2825_v41 = vpop.f32.mrf.mxu1  ;;  %v2881_v17 = vpop.f32.mrf.mxu0 }
 0x19b   :  { %v3917_v36 = vpop.f32.mrf.mxu1  ;;  %v1128_v29 = vpop.f32.mrf.mxu0  ;;  %3063 = vmatmul.mubr.msk.bf16.gmra.mxu0 %vm273_vm2, %v3232_v22 }
 0x19c   :  { %v3921_v6 = vadd.f32 %v1128_v29, %v3841_v52  ;;  %3066 = vmatprep.mubr.msk.bf16.mxu0 %vm3373_vm0, %v3372_v0 }
 0x19d   :  { %v2828_v32 = vpop.f32.mrf.mxu1  ;;  %v2884_v40 = vpop.f32.mrf.mxu0 }
 0x19f   :  { %v3925_v57 = vpop.f32.mrf.mxu1  ;;  %v1131_v46 = vpop.f32.mrf.mxu0 }
 0x1a0   :  { %v3928_v35 = vadd.f32 %v1131_v46, %v3851_v4 }
 0x1a1   :  { %v2829_v43 = vpop.f32.mrf.mxu1  ;;  %v2885_v42 = vpop.f32.mrf.mxu0 }
 0x1a3   :  { %v3930_v61 = vpop.f32.mrf.mxu1  ;;  %v1136_v62 = vpop.f32.mrf.mxu0  ;;  %3067 = vmatmul.mubr.msk.bf16.gmra.mxu0 %vm273_vm2, %v3233_v13  ;;  %v3238_v13 = vld [vmem:[#allocation7 + $0x18] sm:$0xff]  }
 0x1a4   :  { %v3934_v52 = vadd.f32 %v1136_v62, %v3859_v9  ;;  %3079 = vmatpush3.bf16.msra.mxu1 %v3238_v13 }
 0x1a5   :  { %v2832_v56 = vpop.f32.mrf.mxu1  ;;  %v2888_v25 = vpop.f32.mrf.mxu0  ;;  %3080 = vmatprep.subr.bf16.mxu1 %v3372_v0 }
 0x1a7   :  { %v3937_v7 = vpop.f32.mrf.mxu1  ;;  %v1139_v4 = vpop.f32.mrf.mxu0 }
 0x1a8   :  { %v3940_v8 = vadd.f32 %v1139_v4, %v3869_v19  ;;  %v781_v19 = vadd.f32 %v3890_v59, %v3621_v14 }
 0x1a9   :  { %v2833_v11 = vpop.f32.mrf.mxu1  ;;  %v2889_v31 = vpop.f32.mrf.mxu0 }
 0x1aa   :  { %v789_v11 = vadd.f32 %v3903_v51, %v3635_v24 }
 0x1ab   :  { %v3942_v20 = vpop.f32.mrf.mxu1  ;;  %v1144_v47 = vpop.f32.mrf.mxu0 }
 0x1ac   :  { %v3945_v22 = vadd.f32 %v1144_v47, %v3877_v39 }
 0x1ad   :  { %v2836_v9 = vpop.f32.mrf.mxu1  ;;  %v2892_v41 = vpop.f32.mrf.mxu0 }
 0x1af   :  { %v3947_v17 = vpop.f32.mrf.mxu1  ;;  %v1147_v29 = vpop.f32.mrf.mxu0 }
 0x1b0   :  { %v3950_v32 = vadd.f32 %v1147_v29, %v3885_v27  ;;  %v784_v27 = vadd.f32 %v3898_v26, %v3631_v18  ;;  %v792_v18 = vadd.f32 %v3912_v16, %v3645_v28 }
 0x1b1   :  { %v2837_v40 = vpop.f32.mrf.mxu1  ;;  %v2893_v46 = vpop.f32.mrf.mxu0 }
 0x1b3   :  { %v3954_v43 = vpop.f32.mrf.mxu1  ;;  %v1152_v42 = vpop.f32.mrf.mxu0 }
 0x1b4   :  { %v3956_v60 = vadd.f32 %v1152_v42, %v781_v19  ;;  %v797_v42 = vadd.f32 %v3917_v36, %v3649_v34 }
 0x1b5   :  { %v2840_v39 = vpop.f32.mrf.mxu1  ;;  %v2896_v62 = vpop.f32.mrf.mxu0 }
 0x1b6   :  { %v3239_v39 = vld [vmem:[#allocation7 + $0x10] sm:$0xff]  }
 0x1b7   :  { %v3961_v56 = vpop.f32.mrf.mxu1  ;;  %v1155_v25 = vpop.f32.mrf.mxu0  ;;  %3081 = vmatpush3.bf16.msra.mxu1 %v3239_v39 }
 0x1b8   :  { %v3963_v4 = vadd.f32 %v1155_v25, %v784_v27  ;;  %3082 = vmatprep.subr.bf16.mxu1 %v3372_v0 }
 0x1b9   :  { %v2841_v14 = vpop.f32.mrf.mxu1  ;;  %v2897_v59 = vpop.f32.mrf.mxu0 }
 0x1bb   :  { %v1160_v31 = vpop.f32.mrf.mxu0  ;;  %v1470_v47 = vpop.f32.mrf.mxu1 }
 0x1bc   :  { %v3967_v9 = vadd.f32 %v1160_v31, %v789_v11  ;;  %v3970_v41 = vadd.f32 %v1470_v47, %v3789_v45 }
 0x1bd   :  { %v2900_v29 = vpop.f32.mrf.mxu0  ;;  %v2928_v40 = vpop.f32.mrf.mxu1 }
 0x1bf   :  { %v1163_v26 = vpop.f32.mrf.mxu0  ;;  %v1473_v46 = vpop.f32.mrf.mxu1 }
 0x1c0   :  { %v3974_v19 = vadd.f32 %v1163_v26, %v792_v18  ;;  %v3977_v13 = vadd.f32 %v1473_v46, %v3799_v63  ;;  %v800_v63 = vadd.f32 %v3925_v57, %v3659_v38  ;;  %v808_v26 = vadd.f32 %v3937_v7, %v3673_v48 }
 0x1c1   :  { %v2901_v24 = vpop.f32.mrf.mxu0  ;;  %v2929_v51 = vpop.f32.mrf.mxu1 }
 0x1c3   :  { %v1168_v45 = vpop.f32.mrf.mxu0  ;;  %v1478_v62 = vpop.f32.mrf.mxu1 }
 0x1c4   :  { %v3981_v27 = vadd.f32 %v1168_v45, %v797_v42  ;;  %v3984_v25 = vadd.f32 %v1478_v62, %v3807_v3  ;;  %v805_v3 = vadd.f32 %v3930_v61, %v3663_v44  ;;  %v813_v42 = vadd.f32 %v3942_v20, %v3677_v54 }
 0x1c5   :  { %v2904_v28 = vpop.f32.mrf.mxu0  ;;  %v2932_v16 = vpop.f32.mrf.mxu1 }
 0x1c6   :  { %v816_v28 = vadd.f32 %v3947_v17, %v3687_v58  ;;  %v3240_v16 = vld [vmem:[#allocation7 + $0x8] sm:$0xff]  }
 0x1c7   :  { %v1171_v14 = vpop.f32.mrf.mxu0  ;;  %v1481_v59 = vpop.f32.mrf.mxu1  ;;  %3083 = vmatpush3.bf16.msra.mxu1 %v3240_v16 }
 0x1c8   :  { %v3989_v11 = vadd.f32 %v1171_v14, %v800_v63  ;;  %v3992_v34 = vadd.f32 %v1481_v59, %v3817_v10  ;;  %3084 = vmatprep.subr.bf16.mxu1 %v3372_v0 }
 0x1c9   :  { %v2905_v36 = vpop.f32.mrf.mxu0  ;;  %v2933_v31 = vpop.f32.mrf.mxu1 }
 0x1cb   :  { %v1176_v47 = vpop.f32.mrf.mxu0  ;;  %v1486_v29 = vpop.f32.mrf.mxu1 }
 0x1cc   :  { %v3996_v40 = vadd.f32 %v1176_v47, %v805_v3  ;;  %v3999_v18 = vadd.f32 %v1486_v29, %v3825_v30 }
 0x1cd   :  { %v2908_v38 = vpop.f32.mrf.mxu0  ;;  %v2936_v57 = vpop.f32.mrf.mxu1 }
 0x1cf   :  { %v1179_v46 = vpop.f32.mrf.mxu0  ;;  %v1489_v10 = vpop.f32.mrf.mxu1 }
 0x1d0   :  { %v4003_v24 = vadd.f32 %v1179_v46, %v808_v26  ;;  %v4006_v51 = vadd.f32 %v1489_v10, %v3835_v49 }
 0x1d1   :  { %v2909_v44 = vpop.f32.mrf.mxu0  ;;  %v2937_v61 = vpop.f32.mrf.mxu1 }
 0x1d3   :  { %v1184_v39 = vpop.f32.mrf.mxu0  ;;  %v1494_v30 = vpop.f32.mrf.mxu1 }
 0x1d4   :  { %v4010_v45 = vadd.f32 %v1184_v39, %v813_v42  ;;  %v4013_v62 = vadd.f32 %v1494_v30, %v3844_v55  ;;  %v821_v55 = vadd.f32 %v3954_v43, %v3691_v1 }
 0x1d5   :  { %v2912_v48 = vpop.f32.mrf.mxu0  ;;  %v2940_v7 = vpop.f32.mrf.mxu1 }
 0x1d7   :  { %v1187_v49 = vpop.f32.mrf.mxu0  ;;  %v1497_v63 = vpop.f32.mrf.mxu1 }
 0x1d8   :  { %v4017_v14 = vadd.f32 %v1187_v49, %v816_v28  ;;  %v4020_v59 = vadd.f32 %v1497_v63, %v3854_v23  ;;  %v824_v23 = vadd.f32 %v3961_v56, %v3701_v5  ;;  %v3241_v49 = vld [vmem:[#allocation7] sm:$0xff]  }
 0x1d9   :  { %v2913_v54 = vpop.f32.mrf.mxu0  ;;  %v2941_v20 = vpop.f32.mrf.mxu1  ;;  %3085 = vmatpush3.bf16.msra.mxu1 %v3241_v49 }
 0x1da   :  { %3090 = vmatprep.subr.bf16.mxu1 %v3372_v0 }
 0x1db   :  { %v1192_v36 = vpop.f32.mrf.mxu0  ;;  %v1502_v31 = vpop.f32.mrf.mxu1 }
 0x1dc   :  { %v4025_v3 = vadd.f32 %v1192_v36, %v821_v55  ;;  %v4028_v58 = vadd.f32 %v1502_v31, %v3862_v15 }
 0x1dd   :  { %v2916_v17 = vpop.f32.mrf.mxu0  ;;  %v2944_v47 = vpop.f32.mrf.mxu1 }
 0x1df   :  { %v1195_v29 = vpop.f32.mrf.mxu0  ;;  %v1505_v38 = vpop.f32.mrf.mxu1 }
 0x1e0   :  { %v4032_v57 = vadd.f32 %v1195_v29, %v824_v23  ;;  %v4035_v26 = vadd.f32 %v1505_v38, %v3872_v33 }
 0x1e1   :  { %v2917_v1 = vpop.f32.mrf.mxu0  ;;  %v2945_v43 = vpop.f32.mrf.mxu1 }
 0x1e3   :  { %v1510_v46 = vpop.f32.mrf.mxu1  ;;  %v1876_v10 = vpop.f32.mrf.mxu0 }
 0x1e4   :  { %v4038_v44 = vadd.f32 %v1510_v46, %v3880_v53  ;;  %v2011_v15 = vadd.f32 %v1876_v10, %v3970_v41 }
 0x1e5   :  { %v2948_v61 = vpop.f32.mrf.mxu1  ;;  %v3004_v42 = vpop.f32.mrf.mxu0 }
 0x1e7   :  { %v1513_v39 = vpop.f32.mrf.mxu1  ;;  %v1879_v5 = vpop.f32.mrf.mxu0 }
 0x1e8   :  { %v4042_v56 = vadd.f32 %v1513_v39, %v3888_v50  ;;  %v2012_v30 = vadd.f32 %v1879_v5, %v3977_v13 }
 0x1e9   :  { %v2949_v33 = vpop.f32.mrf.mxu1  ;;  %v3005_v48 = vpop.f32.mrf.mxu0 }
 0x1eb   :  { %v1518_v7 = vpop.f32.mrf.mxu1  ;;  %v1884_v28 = vpop.f32.mrf.mxu0 }
 0x1ec   :  { %v4046_v16 = vadd.f32 %v1518_v7, %v3894_v12  ;;  %v2013_v53 = vadd.f32 %v1884_v28, %v3984_v25 }
 0x1ed   :  { %v2952_v41 = vpop.f32.mrf.mxu1  ;;  %v3008_v63 = vpop.f32.mrf.mxu0 }
 0x1ef   :  { %v1521_v54 = vpop.f32.mrf.mxu1  ;;  %v1887_v20 = vpop.f32.mrf.mxu0 }
 0x1f0   :  { %v4051_v50 = vadd.f32 %v1521_v54, %v3901_v2  ;;  %v2014_v13 = vadd.f32 %v1887_v20, %v3992_v34 }
 0x1f1   :  { %v2953_v55 = vpop.f32.mrf.mxu1  ;;  %v3009_v36 = vpop.f32.mrf.mxu0 }
 0x1f3   :  { %v1526_v31 = vpop.f32.mrf.mxu1  ;;  %v1892_v12 = vpop.f32.mrf.mxu0 }
 0x1f4   :  { %v4055_v17 = vadd.f32 %v1526_v31, %v3907_v37  ;;  %v2015_v25 = vadd.f32 %v1892_v12, %v3999_v18 }
 0x1f5   :  { %v2956_v47 = vpop.f32.mrf.mxu1  ;;  %v3012_v23 = vpop.f32.mrf.mxu0 }
 0x1f6   :  { %v2045_v29 = vmax.f32 %v2011_v15, %v2015_v25 }
 0x1f7   :  { %v1529_v38 = vpop.f32.mrf.mxu1  ;;  %v1895_v1 = vpop.f32.mrf.mxu0 }
 0x1f8   :  { %v4059_v43 = vadd.f32 %v1529_v38, %v3915_v21  ;;  %v2016_v2 = vadd.f32 %v1895_v1, %v4006_v51 }
 0x1f9   :  { %v2957_v34 = vpop.f32.mrf.mxu1  ;;  %v3013_v46 = vpop.f32.mrf.mxu0 }
 0x1fa   :  { %v2061_v10 = vmax.f32 %v2012_v30, %v2016_v2 }
 0x1fb   :  { %v1534_v61 = vpop.f32.mrf.mxu1  ;;  %v1900_v42 = vpop.f32.mrf.mxu0 }
 0x1fc   :  { %v4063_v37 = vadd.f32 %v1534_v61, %v3921_v6  ;;  %v2017_v18 = vadd.f32 %v1900_v42, %v4013_v62 }
 0x1fd   :  { %v2960_v39 = vpop.f32.mrf.mxu1  ;;  %v3016_v5 = vpop.f32.mrf.mxu0 }
 0x1fe   :  { %v2046_v15 = vmax.f32 %v2013_v53, %v2017_v18 }
 0x1ff   :  { %v1537_v33 = vpop.f32.mrf.mxu1  ;;  %v1903_v48 = vpop.f32.mrf.mxu0 }
 0x200   :  { %v4067_v21 = vadd.f32 %v1537_v33, %v3928_v35  ;;  %v2018_v51 = vadd.f32 %v1903_v48, %v4020_v59 }
 0x201   :  { %v2961_v7 = vpop.f32.mrf.mxu1  ;;  %v3017_v28 = vpop.f32.mrf.mxu0 }
 0x202   :  { %v2062_v30 = vmax.f32 %v2014_v13, %v2018_v51 }
 0x203   :  { %v1542_v49 = vpop.f32.mrf.mxu1  ;;  %v1908_v41 = vpop.f32.mrf.mxu0 }
 0x204   :  { %v4071_v6 = vadd.f32 %v1542_v49, %v3934_v52  ;;  %v2019_v62 = vadd.f32 %v1908_v41, %v4028_v58 }
 0x205   :  { %v2964_v63 = vpop.f32.mrf.mxu1  ;;  %v3020_v54 = vpop.f32.mrf.mxu0 }
 0x206   :  { %v2047_v53 = vmax.f32 %v2045_v29, %v2019_v62 }
 0x207   :  { %v1545_v20 = vpop.f32.mrf.mxu1  ;;  %v1911_v55 = vpop.f32.mrf.mxu0 }
 0x208   :  { %v4075_v35 = vadd.f32 %v1545_v20, %v3940_v8  ;;  %v2020_v59 = vadd.f32 %v1911_v55, %v4035_v26 }
 0x209   :  { %v2965_v36 = vpop.f32.mrf.mxu1  ;;  %v3021_v31 = vpop.f32.mrf.mxu0 }
 0x20a   :  { %v2063_v13 = vmax.f32 %v2061_v10, %v2020_v59 }
 0x20b   :  { %v1550_v12 = vpop.f32.mrf.mxu1  ;;  %v1916_v25 = vpop.f32.mrf.mxu0 }
 0x20c   :  { %v4079_v52 = vadd.f32 %v1550_v12, %v3945_v22  ;;  %v2021_v58 = vadd.f32 %v1916_v25, %v4038_v44 }
 0x20d   :  { %v2968_v47 = vpop.f32.mrf.mxu1  ;;  %v3024_v23 = vpop.f32.mrf.mxu0 }
 0x20e   :  { %v2048_v29 = vmax.f32 %v2046_v15, %v2021_v58 }
 0x20f   :  { %v1553_v38 = vpop.f32.mrf.mxu1  ;;  %v1919_v1 = vpop.f32.mrf.mxu0 }
 0x210   :  { %v4083_v8 = vadd.f32 %v1553_v38, %v3950_v32  ;;  %v2022_v26 = vadd.f32 %v1919_v1, %v4042_v56 }
 0x211   :  { %v2969_v2 = vpop.f32.mrf.mxu1  ;;  %v3025_v34 = vpop.f32.mrf.mxu0 }
 0x212   :  { %v2064_v46 = vmax.f32 %v2062_v30, %v2022_v26 }
 0x213   :  { %v1558_v10 = vpop.f32.mrf.mxu1  ;;  %v1924_v61 = vpop.f32.mrf.mxu0 }
 0x214   :  { %v4087_v22 = vadd.f32 %v1558_v10, %v3956_v60  ;;  %v2023_v44 = vadd.f32 %v1924_v61, %v4046_v16 }
 0x215   :  { %v2972_v42 = vpop.f32.mrf.mxu1  ;;  %v3028_v18 = vpop.f32.mrf.mxu0 }
 0x216   :  { %v2049_v39 = vmax.f32 %v2047_v53, %v2023_v44 }
 0x217   :  { %v1561_v5 = vpop.f32.mrf.mxu1  ;;  %v1927_v15 = vpop.f32.mrf.mxu0 }
 0x218   :  { %v4091_v32 = vadd.f32 %v1561_v5, %v3963_v4  ;;  %v2024_v56 = vadd.f32 %v1927_v15, %v4051_v50 }
 0x219   :  { %v2973_v33 = vpop.f32.mrf.mxu1  ;;  %v3029_v48 = vpop.f32.mrf.mxu0 }
 0x21a   :  { %v2065_v51 = vmax.f32 %v2063_v13, %v2024_v56 }
 0x21b   :  { %v1566_v7 = vpop.f32.mrf.mxu1  ;;  %v1932_v28 = vpop.f32.mrf.mxu0 }
 0x21c   :  { %v1629_v60 = vadd.f32 %v1566_v7, %v3967_v9  ;;  %v2025_v30 = vadd.f32 %v1932_v28, %v4055_v17 }
 0x21d   :  { %v2976_v16 = vpop.f32.mrf.mxu1  ;;  %v3032_v49 = vpop.f32.mrf.mxu0 }
 0x21e   :  { %v2050_v41 = vmax.f32 %v2048_v29, %v2025_v30 }
 0x21f   :  { %v1569_v62 = vpop.f32.mrf.mxu1  ;;  %v1935_v63 = vpop.f32.mrf.mxu0 }
 0x220   :  { %v1630_v54 = vadd.f32 %v1569_v62, %v3974_v19  ;;  %v2026_v4 = vadd.f32 %v1935_v63, %v4059_v43 }
 0x221   :  { %v2977_v53 = vpop.f32.mrf.mxu1  ;;  %v3033_v50 = vpop.f32.mrf.mxu0 }
 0x222   :  { %v2066_v20 = vmax.f32 %v2064_v46, %v2026_v4 }
 0x223   :  { %v1574_v55 = vpop.f32.mrf.mxu1  ;;  %v1940_v59 = vpop.f32.mrf.mxu0 }
 0x224   :  { %v1631_v36 = vadd.f32 %v1574_v55, %v3981_v27  ;;  %v2027_v9 = vadd.f32 %v1940_v59, %v4063_v37 }
 0x225   :  { %v2980_v31 = vpop.f32.mrf.mxu1  ;;  %v3036_v17 = vpop.f32.mrf.mxu0 }
 0x226   :  { %v2051_v13 = vmax.f32 %v2049_v39, %v2027_v9 }
 0x227   :  { %v1577_v12 = vpop.f32.mrf.mxu1  ;;  %v1943_v25 = vpop.f32.mrf.mxu0 }
 0x228   :  { %v2028_v58 = vadd.f32 %v1943_v25, %v4067_v21 }
 0x229   :  { %v2981_v47 = vpop.f32.mrf.mxu1  ;;  %v3037_v19 = vpop.f32.mrf.mxu0 }
 0x22a   :  { %v2067_v23 = vmax.f32 %v2065_v51, %v2028_v58  ;;  %v1632_v58 = vadd.f32 %v1577_v12, %v3989_v11 }
 0x22b   :  { %v1582_v43 = vpop.f32.mrf.mxu1  ;;  %v1948_v29 = vpop.f32.mrf.mxu0 }
 0x22c   :  { %v2029_v38 = vadd.f32 %v1948_v29, %v4071_v6  ;;  %v1633_v29 = vadd.f32 %v1582_v43, %v3996_v40 }
 0x22d   :  { %v2984_v1 = vpop.f32.mrf.mxu1  ;;  %v3040_v26 = vpop.f32.mrf.mxu0 }
 0x22e   :  { %v2052_v2 = vmax.f32 %v2050_v41, %v2029_v38 }
 0x22f   :  { %v1585_v27 = vpop.f32.mrf.mxu1  ;;  %v1951_v34 = vpop.f32.mrf.mxu0 }
 0x230   :  { %v2030_v37 = vadd.f32 %v1951_v34, %v4075_v35 }
 0x231   :  { %v2985_v46 = vpop.f32.mrf.mxu1  ;;  %v3041_v10 = vpop.f32.mrf.mxu0 }
 0x232   :  { %v2068_v61 = vmax.f32 %v2066_v20, %v2030_v37 }
 0x233   :  { %v1590_v44 = vpop.f32.mrf.mxu1  ;;  %v1956_v42 = vpop.f32.mrf.mxu0 }
 0x234   :  { %v2031_v21 = vadd.f32 %v1956_v42, %v4079_v52 }
 0x235   :  { %v2988_v18 = vpop.f32.mrf.mxu1  ;;  %v3044_v39 = vpop.f32.mrf.mxu0 }
 0x236   :  { %v2053_v5 = vmax.f32 %v2051_v13, %v2031_v21 }
 0x237   :  { %v1593_v15 = vpop.f32.mrf.mxu1  ;;  %v1959_v56 = vpop.f32.mrf.mxu0 }
 0x238   :  { %v2032_v6 = vadd.f32 %v1959_v56, %v4083_v8  ;;  %v1636_v42 = vadd.f32 %v1593_v15, %v4017_v14  ;;  %v2546_v14 = vld [vmem:[%s4144_s2] ss:$0 sm:$0xff] }
 0x239   :  { %v2989_v33 = vpop.f32.mrf.mxu1  ;;  %v3045_v48 = vpop.f32.mrf.mxu0 }
 0x23a   :  { %v2069_v51 = vmax.f32 %v2067_v23, %v2032_v6 }
 0x23b   :  { %v1598_v7 = vpop.f32.mrf.mxu1  ;;  %v1964_v28 = vpop.f32.mrf.mxu0 }
 0x23c   :  { %v2033_v35 = vadd.f32 %v1964_v28, %v4087_v22  ;;  %v1637_v39 = vadd.f32 %v1598_v7, %v4025_v3 }
 0x23d   :  { %v2992_v30 = vpop.f32.mrf.mxu1  ;;  %v3048_v16 = vpop.f32.mrf.mxu0 }
 0x23e   :  { %v2054_v49 = vmax.f32 %v2052_v2, %v2033_v35  ;;  %v1634_v2 = vadd.f32 %v1585_v27, %v4003_v24  ;;  %v3242_v16 = vld [vmem:[#allocation8 + $0x38] sm:$0xff]  }
 0x23f   :  { %v1601_v41 = vpop.f32.mrf.mxu1  ;;  %v1967_v62 = vpop.f32.mrf.mxu0 }
 0x240   :  { %v2034_v52 = vadd.f32 %v1967_v62, %v4091_v32  ;;  %v1638_v6 = vadd.f32 %v1601_v41, %v4032_v57  ;;  %v3244_v41 = vld [vmem:[#allocation8 + $0x28] sm:$0xff]   ;;  %v3245_v62 = vld [vmem:[#allocation8 + $0x20] sm:$0xff]  }
 0x241   :  { %v3049_v63 = vpop.f32.mrf.mxu0  ;;  %v2993_v4 = vpop.f32.mrf.mxu1 }
 0x242   :  { %v2070_v53 = vmax.f32 %v2068_v61, %v2034_v52  ;;  %v3246_v52 = vld [vmem:[#allocation8 + $0x18] sm:$0xff]   ;;  %v3247_v63 = vld [vmem:[#allocation8 + $0x10] sm:$0xff]   ;;  %v3248_v4 = vld [vmem:[#allocation8 + $0x8] sm:$0xff]  }
 0x243   :  { %v1972_v50 = vpop.f32.mrf.mxu0 }
 0x244   :  { %v2035_v20 = vadd.f32 %v1972_v50, %v1629_v60 }
 0x245   :  { %v3052_v8 = vpop.f32.mrf.mxu0 }
 0x246   :  { %v2055_v55 = vmax.f32 %v2053_v5, %v2035_v20 }
 0x247   :  { %v1975_v59 = vpop.f32.mrf.mxu0 }
 0x248   :  { %v2036_v9 = vadd.f32 %v1975_v59, %v1630_v54  ;;  %v2556_v59 = vld [vmem:[%s4148_s6] ss:$0 sm:$0xff]  ;;  %s3374_s6 = smov [#allocation10]  }
 0x249   :  { %v3053_v31 = vpop.f32.mrf.mxu0  ;;  %s2342_s24 = sshll.u32 %s3374_s6, 4  ;;  %s2343_s24 = int_to_ptr.vmem [resolvable:$true] %s2342_s24 }
 0x24a   :  { %v2071_v17 = vmax.f32 %v2069_v51, %v2036_v9  ;;  %p3343_p7 = scmp.lt.s32.totalorder %s2343_s24, %s2343_s24 }
 0x24b   :  { %v1980_v13 = vpop.f32.mrf.mxu0 }
 0x24c   :  { %v2037_v22 = vadd.f32 %v1980_v13, %v1631_v36  ;;  %v1635_v36 = vadd.f32 %v1590_v44, %v4010_v45 }
 0x24d   :  { %v3056_v25 = vpop.f32.mrf.mxu0 }
 0x24e   :  { %v2056_v47 = vmax.f32 %v2054_v49, %v2037_v22  ;;  %v3243_v49 = vld [vmem:[#allocation8 + $0x30] sm:$0xff]  }
 0x24f   :  { %v1983_v19 = vpop.f32.mrf.mxu0 }
 0x250   :  { %v2038_v23 = vadd.f32 %v1983_v19, %v1632_v58 }
 0x251   :  { %v3057_v32 = vpop.f32.mrf.mxu0 }
 0x252   :  { %v2072_v38 = vmax.f32 %v2070_v53, %v2038_v23  ;;  %v3249_v53 = vld [vmem:[#allocation8] sm:$0xff]  }
 0x253   :  { %v1988_v1 = vpop.f32.mrf.mxu0 }
 0x254   :  { %v2039_v60 = vadd.f32 %v1988_v1, %v1633_v29  ;;  %v2547_v29 = vld [vmem:[%s4146_s4] ss:$0 sm:$0xff]  ;;  %s3338_s4 = scalar_lea.vmem %s2343_s24, 256 }
 0x255   :  { %v3060_v26 = vpop.f32.mrf.mxu0  ;;  %p3339_p6 = scmp.ne.s32.totalorder %s2343_s24, %s3338_s4  ;;  %p3344_p8 = scmp.lt.s32.totalorder %s3338_s4, %s3338_s4 }
 0x256   :  { %v2057_v54 = vmax.f32 %v2055_v55, %v2039_v60 }
 0x257   :  { %v1991_v34 = vpop.f32.mrf.mxu0  ;;  %p3345_p9 = por %p3344_p8, %p3343_p7 }
 0x258   :  { %v2040_v37 = vadd.f32 %v1991_v34, %v1634_v2 }
 0x259   :  { %v3061_v46 = vpop.f32.mrf.mxu0  ;;  %p3346_p10 = pnand %p3345_p9, %p3339_p6 }
 0x25a   :  { %v2073_v10 = vmax.f32 %v2071_v17, %v2040_v37 }
 0x25b   :  { %v1996_v11 = vpop.f32.mrf.mxu0 }
 0x25c   :  { %v2041_v12 = vadd.f32 %v1996_v11, %v1635_v36 }
 0x25d   :  { %v3064_v61 = vpop.f32.mrf.mxu0 }
 0x25e   :  { %v2058_v21 = vmax.f32 %v2056_v47, %v2041_v12 }
 0x25f   :  { %v1999_v40 = vpop.f32.mrf.mxu0 }
 0x260   :  { %v2042_v43 = vadd.f32 %v1999_v40, %v1636_v42 }
 0x261   :  { %v3065_v18 = vpop.f32.mrf.mxu0 }
 0x262   :  { %v2074_v5 = vmax.f32 %v2072_v38, %v2042_v43 }
 0x263   :  { %v2004_v24 = vpop.f32.mrf.mxu0 }
 0x264   :  { %v2043_v27 = vadd.f32 %v2004_v24, %v1637_v39 }
 0x265   :  { %v3068_v56 = vpop.f32.mrf.mxu0 }
 0x266   :  { %v2059_v33 = vmax.f32 %v2057_v54, %v2043_v27 }
 0x267   :  { %v2007_v45 = vpop.f32.mrf.mxu0 }
 0x268   :  { %v2060_v44 = vmax.f32 %v2059_v33, %v2058_v21  ;;  %v2044_v48 = vadd.f32 %v2007_v45, %v1638_v6 }
 0x269   :  { %v3069_v15 = vpop.f32.mrf.mxu0 }
 0x26a   :  { %v2075_v51 = vmax.f32 %v2073_v10, %v2044_v48  ;;  %v2084_v28 = vadd.f32 %v2546_v14, %v2060_v44 }
 0x26c   :  { %v2076_v35 = vmax.f32 %v2075_v51, %v2074_v5  ;;  %v2086_v3 = vmax.f32 %v2084_v28, 0.0 }
 0x26e   :  { %v4117_v30 = vadd.f32 %v2546_v14, %v2076_v35 }
 0x270   :  { %v2087_v7 = vmax.f32 %v4117_v30, 0.0 }
 0x272   :  { %v2088_v57 = vpack.c.bf16 %v2087_v7, %v2086_v3 }
 0x274   :  { %3087 = vmatmul.mubr.bf16.vlgmr.msra.gmra.mxu1 %v2088_v57 }
 0x275   :  { %3091 = vmatpush3.bf16.msra.mxu1 %v3242_v16  ;;  %3106 = vmatprep.mubr.msk.bf16.mxu1 %vm3373_vm0, %v3372_v0 }
 0x276   :  { %3092 = vmatprep.subr.bf16.mxu1 %v3372_v0 }
 0x279   :  { %3093 = vmatpush3.bf16.msra.mxu1 %v3243_v49 }
 0x27a   :  { %3094 = vmatprep.subr.bf16.mxu1 %v3372_v0 }
 0x27d   :  { %3095 = vmatpush3.bf16.msra.mxu1 %v3244_v41 }
 0x27e   :  { %3096 = vmatprep.subr.bf16.mxu1 %v3372_v0 }
 0x281   :  { %3097 = vmatpush3.bf16.msra.mxu1 %v3245_v62 }
 0x282   :  { %3098 = vmatprep.subr.bf16.mxu1 %v3372_v0 }
 0x285   :  { %3099 = vmatpush3.bf16.msra.mxu1 %v3246_v52 }
 0x286   :  { %3100 = vmatprep.subr.bf16.mxu1 %v3372_v0 }
 0x289   :  { %3101 = vmatpush3.bf16.msra.mxu1 %v3247_v63 }
 0x28a   :  { %3102 = vmatprep.subr.bf16.mxu1 %v3372_v0 }
 0x28d   :  { %3103 = vmatpush3.bf16.msra.mxu1 %v3248_v4 }
 0x28e   :  { %3104 = vmatprep.subr.bf16.mxu1 %v3372_v0 }
 0x291   :  { %3105 = vmatpush3.bf16.msra.mxu1 %v3249_v53 }
 0x294   :  { %3107 = vmatmul.mubr.bf16.vlgmr.msra.gmra.mxu1 %v2088_v57 }
 0x334   :  { %v2194_v50 = vpop.f32.mrf.mxu1 }
 0x335   :  { %v2195_v38 = vadd.f32 %v2547_v29, %v2194_v50 }
 0x336   :  { %v3088_v20 = vpop.f32.mrf.mxu1 }
 0x337   :  { %v2201_v60 = vmax.f32 %v2195_v38, 0.0 }
 0x338   :  { %v2197_v8 = vpop.f32.mrf.mxu1 }
 0x339   :  { %v2198_v26 = vadd.f32 %v2547_v29, %v2197_v8 }
 0x33a   :  { %v3089_v55 = vpop.f32.mrf.mxu1 }
 0x33b   :  { %v2202_v46 = vmax.f32 %v2198_v26, 0.0 }
 0x354   :  { %v2308_v9 = vpop.f32.mrf.mxu1 }
 0x355   :  { %v2309_v31 = vadd.f32 %v2556_v59, %v2308_v9 }
 0x356   :  { %v3108_v17 = vpop.f32.mrf.mxu1 }
 0x357   :  { %v2565_v13 = vmul.f32 -1.442695, %v2309_v31 }
 0x358   :  { %v2311_v22 = vpop.f32.mrf.mxu1 }
 0x359   :  { %3250 = vpow2.f32 %v2565_v13  ;;  %v2312_v25 = vadd.f32 %v2556_v59, %v2311_v22 }
 0x35a   :  { %v3109_v58 = vpop.f32.mrf.mxu1 }
 0x35b   :  { %v2566_v47 = vmul.f32 -1.442695, %v2312_v25 }
 0x35d   :  { %3252 = vpow2.f32 %v2566_v47 }
 0x366   :  { %v3251_v0 = vpop.eup %3250 }
 0x367   :  { %v2321_v19 = vadd.f32 1.0, %v3251_v0 }
 0x369   :  { %3254 = vrcp.f32 %v2321_v19 }
 0x36a   :  { %v3253_v23 = vpop.eup %3252 }
 0x36b   :  { %v2322_v32 = vadd.f32 1.0, %v3253_v23 }
 0x36d   :  { %3256 = vrcp.f32 %v2322_v32 }
 0x376   :  { %v3255_v1 = vpop.eup %3254 }
 0x377   :  { %v2329_v2 = vsub.f32 1.0, %v3255_v1  ;;  %v2327_v54 = vmul.f32 %v3255_v1, %v2201_v60 }
 0x379   :  { %v2331_v34 = vmul.f32 %v2329_v2, %v2086_v3 }
 0x37a   :  { %v3257_v37 = vpop.eup %3256 }
 0x37b   :  { %v2330_v36 = vsub.f32 1.0, %v3257_v37  ;;  %v2333_v10 = vadd.f32 %v2331_v34, %v2327_v54  ;;  %v2328_v11 = vmul.f32 %v3257_v37, %v2202_v46 }
 0x37d   :  { %v2332_v12 = vmul.f32 %v2330_v36, %v2087_v7  ;;  %2335 = vst [vmem:[#allocation10] sm:$0xff] %v2333_v10 }
 0x37f   :  { %v2334_v61 = vadd.f32 %v2332_v12, %v2328_v11 }
 0x381   :  { %2336 = vst [vmem:[#allocation10 + $0x8] sm:$0xff] %v2334_v61 }
 0x382   :  { %3349 = shalt.err (!%p3346_p10)
}
 0x383   :  { %s3375_s25 = smov 128   ;;  %s3376_s26 = smov 8  }
 0x384   :  { %2348 = dma.vmem_to_hbm [thread:$0]  %s2343_s24, 256, %s4149_s7, [#allocation4], %s3375_s25, %s3375_s25, %s3376_s26  }
 0x385   :  { %3364 = dma.done.wait [#allocation4], 256  }
 0x386   :  { %3365 = vsyncadd [#allocation4], 4294967040 }
 0x387   :  { %2352 = vsyncpa [#allocation3], 1 }
 0x388   :  { %2353 = vsyncpa [#allocation6], 1 }
 0x389   :  { %2354 = vsyncpa [#allocation9], 1 }
 0x38a   :  { %2355 = vsyncpa [#allocation4], 1 }

</bundles_post_ra>
